<compile_context>
chip_gen: v7x
topology: tpu7x:2x2x1
jax: 0.10.0
libtpu: 0.0.40
codegen_flags: <defaults>
</compile_context>

<pallas_src>
import functools

import jax
import jax.numpy as jnp
import numpy as np
from jax.experimental import pallas as pl
from jax.experimental.pallas import tpu as pltpu


# ----------------------------------------------------------------------------
# Fused kernel: 6 x (replication-pad 1 -> conv3x3 -> ReLU) on a lane-dense
# (N*H, W*C) activation, each conv = 3 banded (128,128) MXU matmuls.
# ----------------------------------------------------------------------------
def _dec_conv_kernel(act_ref, wb1_ref, wbm_ref, wb6_ref, o_ref, *,
                     n_batch, height):
    # act_ref : (N*H, W*Cin_total) f32
    # wb1_ref : (3, W*Cin_total, W*Cmid)  bf16  (conv1, banded)
    # wbm_ref : (4, 3, W*Cmid, W*Cmid)    bf16  (conv2..5, banded, stacked)
    # wb6_ref : (3, W*Cmid, W*Cout)       bf16  (conv6, banded)
    # o_ref   : (N*H, W*Cout) f32

    def shift_rows(a, direction):
        # Per-batch-element row shift with H-edge replication
        # (ReplicationPad2d along H).  Static slices + sublane concats:
        # XLU work that overlaps with the MXU.
        parts = []
        for n in range(n_batch):
            blk = a[n * height:(n + 1) * height]
            if direction < 0:   # row h-1, clamped:  [b0, b0, b1, ..., b_{H-2}]
                parts.append(jnp.concatenate([blk[:1], blk[:-1]], axis=0))
            else:               # row h+1, clamped:  [b1, ..., b_{H-1}, b_{H-1}]
                parts.append(jnp.concatenate([blk[1:], blk[-1:]], axis=0))
        return jnp.concatenate(parts, axis=0)

    def band_conv_relu(a, get_wb):
        # One 3x3 replication-padded conv + ReLU as three accumulated MXU
        # matmuls against banded (W*Cin, W*Cout) weights (kx taps and W-edge
        # replication pre-folded into the band wrapper-side).
        def mm(x, w):
            return jax.lax.dot_general(
                x.astype(jnp.bfloat16), w,           # bf16 x bf16 -> f32 acc
                dimension_numbers=(((1,), (0,)), ((), ())),
                preferred_element_type=jnp.float32)

        y = (mm(shift_rows(a, -1), get_wb(0))        # ky = 0  (row h-1)
             + mm(a, get_wb(1))                      # ky = 1  (row h)
             + mm(shift_rows(a, +1), get_wb(2)))     # ky = 2  (row h+1)
        return jnp.maximum(y, 0.0)

    act = act_ref[...].astype(jnp.float32)

    # conv1
    act = band_conv_relu(act, lambda ky: wb1_ref[ky])

    # conv2 .. conv5 : identical layers, stacked weights, fori_loop bounds the
    # per-layer structure (unrolled for LLO scheduling visibility).
    def mid_layer(i, a):
        return band_conv_relu(a, lambda ky: wbm_ref[i, ky])
    act = jax.lax.fori_loop(0, wbm_ref.shape[0], mid_layer, act, unroll=True)

    # conv6
    act = band_conv_relu(act, lambda ky: wb6_ref[ky])

    o_ref[...] = act.astype(o_ref.dtype)


# ----------------------------------------------------------------------------
# Wrapper-side weight preprocessing: HWIO (3,3,Cin,Cout) -> banded
# (3, W*Cin, W*Cout) block matrices with kx taps + W-edge replication folded
# into the band.  Built once, cast to bf16 for the MXU.
# ----------------------------------------------------------------------------
def _band_weight(k_hwio, width):
    cin, cout = int(k_hwio.shape[2]), int(k_hwio.shape[3])
    # S[kx, win, w] = 1 iff clamp(w + kx - 1, 0, W-1) == win
    s = np.zeros((3, width, width), np.float32)
    for kx in range(3):
        for w in range(width):
            win = min(max(w + kx - 1, 0), width - 1)
            s[kx, win, w] = 1.0
    s = jnp.asarray(s)
    # B[ky, v*Cin+i, w*Cout+o] = sum_kx S[kx,v,w] * K[ky,kx,i,o]
    b = jnp.einsum("xvw,yxio->yviwo", s, k_hwio)
    return b.reshape(3, width * cin, width * cout)


def prepare_banded_weights(weights_hwio, width):
    wb = [_band_weight(w, width).astype(jnp.bfloat16) for w in weights_hwio]
    wb1 = wb[0]
    wbm = jnp.stack(wb[1:5], axis=0)     # (4, 3, W*Cm, W*Cm)
    wb6 = wb[5]
    return wb1, wbm, wb6


# ----------------------------------------------------------------------------
# DEC_Conv forward (matches the PyTorch module, bias=False)
# ----------------------------------------------------------------------------
def dec_conv_forward(x_nchw, x_in_nchw, wb1, wbm, wb6):
    n, c0, _, _ = x_nchw.shape
    _, c1, h, w = x_in_nchw.shape

    # Upsample(scale_factor=2, nearest) + F.pad to x_in spatial size
    # (tiny XLA glue).
    x = jnp.repeat(jnp.repeat(x_nchw, 2, axis=2), 2, axis=3)
    dy = h - x.shape[2]
    dx = w - x.shape[3]
    x = jnp.pad(x, ((0, 0), (0, 0),
                    (dy // 2, dy - dy // 2), (dx // 2, dx - dx // 2)))

    # torch.cat((x, x_in), dim=1) wrapper-side, then pack lane-dense:
    # NCHW -> (N*H, W*C) with channel fastest on the lane axis.
    xc = jnp.concatenate([x, x_in_nchw], axis=1)          # (N, C, H, W)
    c_tot = c0 + c1
    act = jnp.transpose(xc, (0, 2, 3, 1)).reshape(n * h, w * c_tot)

    cout = wb6.shape[-1] // w
    kernel = functools.partial(_dec_conv_kernel, n_batch=n, height=h)

    out = pl.pallas_call(
        kernel,
        out_shape=jax.ShapeDtypeStruct((n * h, w * cout), x_nchw.dtype),
        grid=(1,),
        in_specs=[
            pl.BlockSpec((n * h, w * c_tot), lambda i: (0, 0)),
            pl.BlockSpec(wb1.shape, lambda i: (0, 0, 0)),
            pl.BlockSpec(wbm.shape, lambda i: (0, 0, 0, 0)),
            pl.BlockSpec(wb6.shape, lambda i: (0, 0, 0)),
        ],
        out_specs=pl.BlockSpec((n * h, w * cout), lambda i: (0, 0)),
        compiler_params=pltpu.CompilerParams(
            dimension_semantics=("arbitrary",)),
    )(act, wb1, wbm, wb6)

    # (N*H, W*Cout) -> NCHW
    return jnp.transpose(out.reshape(n, h, w, cout), (0, 3, 1, 2))


# Pure-JAX f32 reference (lax.conv path) for verification.
def _reference_forward(x_nchw, x_in_nchw, weights_hwio):
    x = jnp.repeat(jnp.repeat(x_nchw, 2, axis=2), 2, axis=3)
    dy = x_in_nchw.shape[2] - x.shape[2]
    dx = x_in_nchw.shape[3] - x.shape[3]
    x = jnp.pad(x, ((0, 0), (0, 0),
                    (dy // 2, dy - dy // 2), (dx // 2, dx - dx // 2)))
    x = jnp.concatenate([x, x_in_nchw], axis=1)
    x = jnp.transpose(x, (0, 2, 3, 1))                    # NHWC
    for wgt in weights_hwio:
        xp = jnp.pad(x, ((0, 0), (1, 1), (1, 1), (0, 0)), mode="edge")
        y = jax.lax.conv_general_dilated(
            xp, wgt, window_strides=(1, 1), padding="VALID",
            dimension_numbers=("NHWC", "HWIO", "NHWC"))
        x = jnp.maximum(y, 0.0)
    return jnp.transpose(x, (0, 3, 1, 2))


if __name__ == "__main__":
    # Shapes consistent with the module:
    #   x:    (N, 4, 8, 8)   -> nearest-upsampled to 16x16
    #   x_in: (N, 4, 16, 16) ; concat channels = 8 = in_channels
    N = 2
    in_channels, mid_channels, out_channels = 8, 8, 8
    key = jax.random.PRNGKey(0)
    k_x, k_xin, *k_w = jax.random.split(key, 2 + 6)

    x = jax.random.normal(k_x, (N, 4, 8, 8), dtype=jnp.float32)
    x_in = jax.random.normal(k_xin, (N, 4, 16, 16), dtype=jnp.float32)

    # Deterministic Conv2d weights, stored directly as HWIO (3, 3, Cin, Cout).
    chan_io = [(in_channels, mid_channels)] + \
              [(mid_channels, mid_channels)] * 4 + \
              [(mid_channels, out_channels)]
    weights = []
    for kk, (ci, co) in zip(k_w, chan_io):
        bound = 1.0 / np.sqrt(ci * 3 * 3)
        weights.append(jax.random.uniform(
            kk, (3, 3, ci, co), minval=-bound, maxval=bound,
            dtype=jnp.float32))

    W_sp = x_in.shape[3]
    wb1, wbm, wb6 = prepare_banded_weights(weights, W_sp)

    fwd = jax.jit(dec_conv_forward)
    out = jax.block_until_ready(fwd(x, x_in, wb1, wbm, wb6))
    ref = jax.block_until_ready(_reference_forward(x, x_in, weights))

    assert out.shape == (N, out_channels, 16, 16), out.shape
    # Tolerance loosened vs. a pure-f32 check: MXU operands are bf16 across
    # six chained conv layers (accumulation stays f32).
    assert np.allclose(np.asarray(out), np.asarray(ref), atol=3e-2, rtol=3e-2)

    print("KERNEL_OK")
</pallas_src>

<mosaic_0001>
module attributes {stable_mosaic.version = 11 : i64} {
  func.func @_dec_conv_kernel(%arg0: i32, %arg1: memref<32x128xf32, #tpu.memory_space<vmem>>, %arg2: memref<3x128x128xbf16, #tpu.memory_space<vmem>>, %arg3: memref<4x3x128x128xbf16, #tpu.memory_space<vmem>>, %arg4: memref<3x128x128xbf16, #tpu.memory_space<vmem>>, %arg5: memref<32x128xf32, #tpu.memory_space<vmem>>) attributes {dimension_semantics = [#tpu.dimension_semantics<arbitrary>], iteration_bounds = array<i64: 1>, scalar_prefetch = 0 : i64, scratch_operands = 0 : i64, tpu.core_type = #tpu.core_type<tc>, window_params = [{pipeline_mode = #tpu.pipeline_mode<synchronous>, transform_indices = @transform_0, window_bounds = array<i64: 32, 128>}, {pipeline_mode = #tpu.pipeline_mode<synchronous>, transform_indices = @transform_1, window_bounds = array<i64: 3, 128, 128>}, {pipeline_mode = #tpu.pipeline_mode<synchronous>, transform_indices = @transform_2, window_bounds = array<i64: 4, 3, 128, 128>}, {pipeline_mode = #tpu.pipeline_mode<synchronous>, transform_indices = @transform_3, window_bounds = array<i64: 3, 128, 128>}, {pipeline_mode = #tpu.pipeline_mode<synchronous>, transform_indices = @transform_4, window_bounds = array<i64: 32, 128>}]} {
    %c0 = arith.constant 0 : index
    %c0_0 = arith.constant 0 : index
    %0 = vector.load %arg1[%c0, %c0_0] : memref<32x128xf32, #tpu.memory_space<vmem>>, vector<32x128xf32>
    %1 = vector.extract_strided_slice %0 {offsets = [0, 0], sizes = [16, 128], strides = [1, 1]} : vector<32x128xf32> to vector<16x128xf32>
    %2 = vector.extract_strided_slice %1 {offsets = [0, 0], sizes = [1, 128], strides = [1, 1]} : vector<16x128xf32> to vector<1x128xf32>
    %3 = vector.extract_strided_slice %1 {offsets = [0, 0], sizes = [15, 128], strides = [1, 1]} : vector<16x128xf32> to vector<15x128xf32>
    %4 = tpu.concatenate %2, %3 in 0 : vector<1x128xf32>, vector<15x128xf32> -> vector<16x128xf32>
    %5 = vector.extract_strided_slice %0 {offsets = [16, 0], sizes = [16, 128], strides = [1, 1]} : vector<32x128xf32> to vector<16x128xf32>
    %6 = vector.extract_strided_slice %5 {offsets = [0, 0], sizes = [1, 128], strides = [1, 1]} : vector<16x128xf32> to vector<1x128xf32>
    %7 = vector.extract_strided_slice %5 {offsets = [0, 0], sizes = [15, 128], strides = [1, 1]} : vector<16x128xf32> to vector<15x128xf32>
    %8 = tpu.concatenate %6, %7 in 0 : vector<1x128xf32>, vector<15x128xf32> -> vector<16x128xf32>
    %9 = tpu.concatenate %4, %8 in 0 : vector<16x128xf32>, vector<16x128xf32> -> vector<32x128xf32>
    %c0_1 = arith.constant 0 : index
    %c0_2 = arith.constant 0 : index
    %c0_3 = arith.constant 0 : index
    %10 = vector.load %arg2[%c0_1, %c0_2, %c0_3] : memref<3x128x128xbf16, #tpu.memory_space<vmem>>, vector<1x128x128xbf16>
    %11 = vector.shape_cast %10 : vector<1x128x128xbf16> to vector<128x128xbf16>
    %12 = arith.truncf %9 : vector<32x128xf32> to vector<32x128xbf16>
    %cst = arith.constant dense<0.000000e+00> : vector<32x128xf32>
    %13 = tpu.matmul %12, %11, %cst {dimension_numbers = #tpu.dot_dimension_numbers<[1], [0], [0], [1], [0, 0, 1, 1], [], []>} : vector<32x128xbf16>, vector<128x128xbf16>, vector<32x128xf32> -> vector<32x128xf32>
    %c1 = arith.constant 1 : index
    %c0_4 = arith.constant 0 : index
    %c0_5 = arith.constant 0 : index
    %14 = vector.load %arg2[%c1, %c0_4, %c0_5] : memref<3x128x128xbf16, #tpu.memory_space<vmem>>, vector<1x128x128xbf16>
    %15 = vector.shape_cast %14 : vector<1x128x128xbf16> to vector<128x128xbf16>
    %16 = arith.truncf %0 : vector<32x128xf32> to vector<32x128xbf16>
    %cst_6 = arith.constant dense<0.000000e+00> : vector<32x128xf32>
    %17 = tpu.matmul %16, %15, %cst_6 {dimension_numbers = #tpu.dot_dimension_numbers<[1], [0], [0], [1], [0, 0, 1, 1], [], []>} : vector<32x128xbf16>, vector<128x128xbf16>, vector<32x128xf32> -> vector<32x128xf32>
    %18 = arith.addf %13, %17 : vector<32x128xf32>
    %19 = vector.extract_strided_slice %0 {offsets = [0, 0], sizes = [16, 128], strides = [1, 1]} : vector<32x128xf32> to vector<16x128xf32>
    %20 = vector.extract_strided_slice %19 {offsets = [1, 0], sizes = [15, 128], strides = [1, 1]} : vector<16x128xf32> to vector<15x128xf32>
    %21 = vector.extract_strided_slice %19 {offsets = [15, 0], sizes = [1, 128], strides = [1, 1]} : vector<16x128xf32> to vector<1x128xf32>
    %22 = tpu.concatenate %20, %21 in 0 : vector<15x128xf32>, vector<1x128xf32> -> vector<16x128xf32>
    %23 = vector.extract_strided_slice %0 {offsets = [16, 0], sizes = [16, 128], strides = [1, 1]} : vector<32x128xf32> to vector<16x128xf32>
    %24 = vector.extract_strided_slice %23 {offsets = [1, 0], sizes = [15, 128], strides = [1, 1]} : vector<16x128xf32> to vector<15x128xf32>
    %25 = vector.extract_strided_slice %23 {offsets = [15, 0], sizes = [1, 128], strides = [1, 1]} : vector<16x128xf32> to vector<1x128xf32>
    %26 = tpu.concatenate %24, %25 in 0 : vector<15x128xf32>, vector<1x128xf32> -> vector<16x128xf32>
    %27 = tpu.concatenate %22, %26 in 0 : vector<16x128xf32>, vector<16x128xf32> -> vector<32x128xf32>
    %c2 = arith.constant 2 : index
    %c0_7 = arith.constant 0 : index
    %c0_8 = arith.constant 0 : index
    %28 = vector.load %arg2[%c2, %c0_7, %c0_8] : memref<3x128x128xbf16, #tpu.memory_space<vmem>>, vector<1x128x128xbf16>
    %29 = vector.shape_cast %28 : vector<1x128x128xbf16> to vector<128x128xbf16>
    %30 = arith.truncf %27 : vector<32x128xf32> to vector<32x128xbf16>
    %cst_9 = arith.constant dense<0.000000e+00> : vector<32x128xf32>
    %31 = tpu.matmul %30, %29, %cst_9 {dimension_numbers = #tpu.dot_dimension_numbers<[1], [0], [0], [1], [0, 0, 1, 1], [], []>} : vector<32x128xbf16>, vector<128x128xbf16>, vector<32x128xf32> -> vector<32x128xf32>
    %32 = arith.addf %18, %31 : vector<32x128xf32>
    %cst_10 = arith.constant 0.000000e+00 : f32
    %33 = vector.broadcast %cst_10 : f32 to vector<32x128xf32>
    %34 = arith.maximumf %32, %33 : vector<32x128xf32>
    %c0_i32 = arith.constant 0 : i32
    %35 = vector.extract_strided_slice %34 {offsets = [0, 0], sizes = [16, 128], strides = [1, 1]} : vector<32x128xf32> to vector<16x128xf32>
    %36 = vector.extract_strided_slice %35 {offsets = [0, 0], sizes = [1, 128], strides = [1, 1]} : vector<16x128xf32> to vector<1x128xf32>
    %37 = vector.extract_strided_slice %35 {offsets = [0, 0], sizes = [15, 128], strides = [1, 1]} : vector<16x128xf32> to vector<15x128xf32>
    %38 = tpu.concatenate %36, %37 in 0 : vector<1x128xf32>, vector<15x128xf32> -> vector<16x128xf32>
    %39 = vector.extract_strided_slice %34 {offsets = [16, 0], sizes = [16, 128], strides = [1, 1]} : vector<32x128xf32> to vector<16x128xf32>
    %40 = vector.extract_strided_slice %39 {offsets = [0, 0], sizes = [1, 128], strides = [1, 1]} : vector<16x128xf32> to vector<1x128xf32>
    %41 = vector.extract_strided_slice %39 {offsets = [0, 0], sizes = [15, 128], strides = [1, 1]} : vector<16x128xf32> to vector<15x128xf32>
    %42 = tpu.concatenate %40, %41 in 0 : vector<1x128xf32>, vector<15x128xf32> -> vector<16x128xf32>
    %43 = tpu.concatenate %38, %42 in 0 : vector<16x128xf32>, vector<16x128xf32> -> vector<32x128xf32>
    %44 = arith.index_cast %c0_i32 : i32 to index
    %c0_11 = arith.constant 0 : index
    %c0_12 = arith.constant 0 : index
    %c0_13 = arith.constant 0 : index
    %45 = vector.load %arg3[%44, %c0_11, %c0_12, %c0_13] : memref<4x3x128x128xbf16, #tpu.memory_space<vmem>>, vector<1x1x128x128xbf16>
    %46 = vector.shape_cast %45 : vector<1x1x128x128xbf16> to vector<128x128xbf16>
    %47 = arith.truncf %43 : vector<32x128xf32> to vector<32x128xbf16>
    %cst_14 = arith.constant dense<0.000000e+00> : vector<32x128xf32>
    %48 = tpu.matmul %47, %46, %cst_14 {dimension_numbers = #tpu.dot_dimension_numbers<[1], [0], [0], [1], [0, 0, 1, 1], [], []>} : vector<32x128xbf16>, vector<128x128xbf16>, vector<32x128xf32> -> vector<32x128xf32>
    %49 = arith.index_cast %c0_i32 : i32 to index
    %c1_15 = arith.constant 1 : index
    %c0_16 = arith.constant 0 : index
    %c0_17 = arith.constant 0 : index
    %50 = vector.load %arg3[%49, %c1_15, %c0_16, %c0_17] : memref<4x3x128x128xbf16, #tpu.memory_space<vmem>>, vector<1x1x128x128xbf16>
    %51 = vector.shape_cast %50 : vector<1x1x128x128xbf16> to vector<128x128xbf16>
    %52 = arith.truncf %34 : vector<32x128xf32> to vector<32x128xbf16>
    %cst_18 = arith.constant dense<0.000000e+00> : vector<32x128xf32>
    %53 = tpu.matmul %52, %51, %cst_18 {dimension_numbers = #tpu.dot_dimension_numbers<[1], [0], [0], [1], [0, 0, 1, 1], [], []>} : vector<32x128xbf16>, vector<128x128xbf16>, vector<32x128xf32> -> vector<32x128xf32>
    %54 = arith.addf %48, %53 : vector<32x128xf32>
    %55 = vector.extract_strided_slice %34 {offsets = [0, 0], sizes = [16, 128], strides = [1, 1]} : vector<32x128xf32> to vector<16x128xf32>
    %56 = vector.extract_strided_slice %55 {offsets = [1, 0], sizes = [15, 128], strides = [1, 1]} : vector<16x128xf32> to vector<15x128xf32>
    %57 = vector.extract_strided_slice %55 {offsets = [15, 0], sizes = [1, 128], strides = [1, 1]} : vector<16x128xf32> to vector<1x128xf32>
    %58 = tpu.concatenate %56, %57 in 0 : vector<15x128xf32>, vector<1x128xf32> -> vector<16x128xf32>
    %59 = vector.extract_strided_slice %34 {offsets = [16, 0], sizes = [16, 128], strides = [1, 1]} : vector<32x128xf32> to vector<16x128xf32>
    %60 = vector.extract_strided_slice %59 {offsets = [1, 0], sizes = [15, 128], strides = [1, 1]} : vector<16x128xf32> to vector<15x128xf32>
    %61 = vector.extract_strided_slice %59 {offsets = [15, 0], sizes = [1, 128], strides = [1, 1]} : vector<16x128xf32> to vector<1x128xf32>
    %62 = tpu.concatenate %60, %61 in 0 : vector<15x128xf32>, vector<1x128xf32> -> vector<16x128xf32>
    %63 = tpu.concatenate %58, %62 in 0 : vector<16x128xf32>, vector<16x128xf32> -> vector<32x128xf32>
    %64 = arith.index_cast %c0_i32 : i32 to index
    %c2_19 = arith.constant 2 : index
    %c0_20 = arith.constant 0 : index
    %c0_21 = arith.constant 0 : index
    %65 = vector.load %arg3[%64, %c2_19, %c0_20, %c0_21] : memref<4x3x128x128xbf16, #tpu.memory_space<vmem>>, vector<1x1x128x128xbf16>
    %66 = vector.shape_cast %65 : vector<1x1x128x128xbf16> to vector<128x128xbf16>
    %67 = arith.truncf %63 : vector<32x128xf32> to vector<32x128xbf16>
    %cst_22 = arith.constant dense<0.000000e+00> : vector<32x128xf32>
    %68 = tpu.matmul %67, %66, %cst_22 {dimension_numbers = #tpu.dot_dimension_numbers<[1], [0], [0], [1], [0, 0, 1, 1], [], []>} : vector<32x128xbf16>, vector<128x128xbf16>, vector<32x128xf32> -> vector<32x128xf32>
    %69 = arith.addf %54, %68 : vector<32x128xf32>
    %cst_23 = arith.constant 0.000000e+00 : f32
    %70 = vector.broadcast %cst_23 : f32 to vector<32x128xf32>
    %71 = arith.maximumf %69, %70 : vector<32x128xf32>
    %c1_i32 = arith.constant 1 : i32
    %72 = vector.extract_strided_slice %71 {offsets = [0, 0], sizes = [16, 128], strides = [1, 1]} : vector<32x128xf32> to vector<16x128xf32>
    %73 = vector.extract_strided_slice %72 {offsets = [0, 0], sizes = [1, 128], strides = [1, 1]} : vector<16x128xf32> to vector<1x128xf32>
    %74 = vector.extract_strided_slice %72 {offsets = [0, 0], sizes = [15, 128], strides = [1, 1]} : vector<16x128xf32> to vector<15x128xf32>
    %75 = tpu.concatenate %73, %74 in 0 : vector<1x128xf32>, vector<15x128xf32> -> vector<16x128xf32>
    %76 = vector.extract_strided_slice %71 {offsets = [16, 0], sizes = [16, 128], strides = [1, 1]} : vector<32x128xf32> to vector<16x128xf32>
    %77 = vector.extract_strided_slice %76 {offsets = [0, 0], sizes = [1, 128], strides = [1, 1]} : vector<16x128xf32> to vector<1x128xf32>
    %78 = vector.extract_strided_slice %76 {offsets = [0, 0], sizes = [15, 128], strides = [1, 1]} : vector<16x128xf32> to vector<15x128xf32>
    %79 = tpu.concatenate %77, %78 in 0 : vector<1x128xf32>, vector<15x128xf32> -> vector<16x128xf32>
    %80 = tpu.concatenate %75, %79 in 0 : vector<16x128xf32>, vector<16x128xf32> -> vector<32x128xf32>
    %81 = arith.index_cast %c1_i32 : i32 to index
    %c0_24 = arith.constant 0 : index
    %c0_25 = arith.constant 0 : index
    %c0_26 = arith.constant 0 : index
    %82 = vector.load %arg3[%81, %c0_24, %c0_25, %c0_26] : memref<4x3x128x128xbf16, #tpu.memory_space<vmem>>, vector<1x1x128x128xbf16>
    %83 = vector.shape_cast %82 : vector<1x1x128x128xbf16> to vector<128x128xbf16>
    %84 = arith.truncf %80 : vector<32x128xf32> to vector<32x128xbf16>
    %cst_27 = arith.constant dense<0.000000e+00> : vector<32x128xf32>
    %85 = tpu.matmul %84, %83, %cst_27 {dimension_numbers = #tpu.dot_dimension_numbers<[1], [0], [0], [1], [0, 0, 1, 1], [], []>} : vector<32x128xbf16>, vector<128x128xbf16>, vector<32x128xf32> -> vector<32x128xf32>
    %86 = arith.index_cast %c1_i32 : i32 to index
    %c1_28 = arith.constant 1 : index
    %c0_29 = arith.constant 0 : index
    %c0_30 = arith.constant 0 : index
    %87 = vector.load %arg3[%86, %c1_28, %c0_29, %c0_30] : memref<4x3x128x128xbf16, #tpu.memory_space<vmem>>, vector<1x1x128x128xbf16>
    %88 = vector.shape_cast %87 : vector<1x1x128x128xbf16> to vector<128x128xbf16>
    %89 = arith.truncf %71 : vector<32x128xf32> to vector<32x128xbf16>
    %cst_31 = arith.constant dense<0.000000e+00> : vector<32x128xf32>
    %90 = tpu.matmul %89, %88, %cst_31 {dimension_numbers = #tpu.dot_dimension_numbers<[1], [0], [0], [1], [0, 0, 1, 1], [], []>} : vector<32x128xbf16>, vector<128x128xbf16>, vector<32x128xf32> -> vector<32x128xf32>
    %91 = arith.addf %85, %90 : vector<32x128xf32>
    %92 = vector.extract_strided_slice %71 {offsets = [0, 0], sizes = [16, 128], strides = [1, 1]} : vector<32x128xf32> to vector<16x128xf32>
    %93 = vector.extract_strided_slice %92 {offsets = [1, 0], sizes = [15, 128], strides = [1, 1]} : vector<16x128xf32> to vector<15x128xf32>
    %94 = vector.extract_strided_slice %92 {offsets = [15, 0], sizes = [1, 128], strides = [1, 1]} : vector<16x128xf32> to vector<1x128xf32>
    %95 = tpu.concatenate %93, %94 in 0 : vector<15x128xf32>, vector<1x128xf32> -> vector<16x128xf32>
    %96 = vector.extract_strided_slice %71 {offsets = [16, 0], sizes = [16, 128], strides = [1, 1]} : vector<32x128xf32> to vector<16x128xf32>
    %97 = vector.extract_strided_slice %96 {offsets = [1, 0], sizes = [15, 128], strides = [1, 1]} : vector<16x128xf32> to vector<15x128xf32>
    %98 = vector.extract_strided_slice %96 {offsets = [15, 0], sizes = [1, 128], strides = [1, 1]} : vector<16x128xf32> to vector<1x128xf32>
    %99 = tpu.concatenate %97, %98 in 0 : vector<15x128xf32>, vector<1x128xf32> -> vector<16x128xf32>
    %100 = tpu.concatenate %95, %99 in 0 : vector<16x128xf32>, vector<16x128xf32> -> vector<32x128xf32>
    %101 = arith.index_cast %c1_i32 : i32 to index
    %c2_32 = arith.constant 2 : index
    %c0_33 = arith.constant 0 : index
    %c0_34 = arith.constant 0 : index
    %102 = vector.load %arg3[%101, %c2_32, %c0_33, %c0_34] : memref<4x3x128x128xbf16, #tpu.memory_space<vmem>>, vector<1x1x128x128xbf16>
    %103 = vector.shape_cast %102 : vector<1x1x128x128xbf16> to vector<128x128xbf16>
    %104 = arith.truncf %100 : vector<32x128xf32> to vector<32x128xbf16>
    %cst_35 = arith.constant dense<0.000000e+00> : vector<32x128xf32>
    %105 = tpu.matmul %104, %103, %cst_35 {dimension_numbers = #tpu.dot_dimension_numbers<[1], [0], [0], [1], [0, 0, 1, 1], [], []>} : vector<32x128xbf16>, vector<128x128xbf16>, vector<32x128xf32> -> vector<32x128xf32>
    %106 = arith.addf %91, %105 : vector<32x128xf32>
    %cst_36 = arith.constant 0.000000e+00 : f32
    %107 = vector.broadcast %cst_36 : f32 to vector<32x128xf32>
    %108 = arith.maximumf %106, %107 : vector<32x128xf32>
    %c2_i32 = arith.constant 2 : i32
    %109 = vector.extract_strided_slice %108 {offsets = [0, 0], sizes = [16, 128], strides = [1, 1]} : vector<32x128xf32> to vector<16x128xf32>
    %110 = vector.extract_strided_slice %109 {offsets = [0, 0], sizes = [1, 128], strides = [1, 1]} : vector<16x128xf32> to vector<1x128xf32>
    %111 = vector.extract_strided_slice %109 {offsets = [0, 0], sizes = [15, 128], strides = [1, 1]} : vector<16x128xf32> to vector<15x128xf32>
    %112 = tpu.concatenate %110, %111 in 0 : vector<1x128xf32>, vector<15x128xf32> -> vector<16x128xf32>
    %113 = vector.extract_strided_slice %108 {offsets = [16, 0], sizes = [16, 128], strides = [1, 1]} : vector<32x128xf32> to vector<16x128xf32>
    %114 = vector.extract_strided_slice %113 {offsets = [0, 0], sizes = [1, 128], strides = [1, 1]} : vector<16x128xf32> to vector<1x128xf32>
    %115 = vector.extract_strided_slice %113 {offsets = [0, 0], sizes = [15, 128], strides = [1, 1]} : vector<16x128xf32> to vector<15x128xf32>
    %116 = tpu.concatenate %114, %115 in 0 : vector<1x128xf32>, vector<15x128xf32> -> vector<16x128xf32>
    %117 = tpu.concatenate %112, %116 in 0 : vector<16x128xf32>, vector<16x128xf32> -> vector<32x128xf32>
    %118 = arith.index_cast %c2_i32 : i32 to index
    %c0_37 = arith.constant 0 : index
    %c0_38 = arith.constant 0 : index
    %c0_39 = arith.constant 0 : index
    %119 = vector.load %arg3[%118, %c0_37, %c0_38, %c0_39] : memref<4x3x128x128xbf16, #tpu.memory_space<vmem>>, vector<1x1x128x128xbf16>
    %120 = vector.shape_cast %119 : vector<1x1x128x128xbf16> to vector<128x128xbf16>
    %121 = arith.truncf %117 : vector<32x128xf32> to vector<32x128xbf16>
    %cst_40 = arith.constant dense<0.000000e+00> : vector<32x128xf32>
    %122 = tpu.matmul %121, %120, %cst_40 {dimension_numbers = #tpu.dot_dimension_numbers<[1], [0], [0], [1], [0, 0, 1, 1], [], []>} : vector<32x128xbf16>, vector<128x128xbf16>, vector<32x128xf32> -> vector<32x128xf32>
    %123 = arith.index_cast %c2_i32 : i32 to index
    %c1_41 = arith.constant 1 : index
    %c0_42 = arith.constant 0 : index
    %c0_43 = arith.constant 0 : index
    %124 = vector.load %arg3[%123, %c1_41, %c0_42, %c0_43] : memref<4x3x128x128xbf16, #tpu.memory_space<vmem>>, vector<1x1x128x128xbf16>
    %125 = vector.shape_cast %124 : vector<1x1x128x128xbf16> to vector<128x128xbf16>
    %126 = arith.truncf %108 : vector<32x128xf32> to vector<32x128xbf16>
    %cst_44 = arith.constant dense<0.000000e+00> : vector<32x128xf32>
    %127 = tpu.matmul %126, %125, %cst_44 {dimension_numbers = #tpu.dot_dimension_numbers<[1], [0], [0], [1], [0, 0, 1, 1], [], []>} : vector<32x128xbf16>, vector<128x128xbf16>, vector<32x128xf32> -> vector<32x128xf32>
    %128 = arith.addf %122, %127 : vector<32x128xf32>
    %129 = vector.extract_strided_slice %108 {offsets = [0, 0], sizes = [16, 128], strides = [1, 1]} : vector<32x128xf32> to vector<16x128xf32>
    %130 = vector.extract_strided_slice %129 {offsets = [1, 0], sizes = [15, 128], strides = [1, 1]} : vector<16x128xf32> to vector<15x128xf32>
    %131 = vector.extract_strided_slice %129 {offsets = [15, 0], sizes = [1, 128], strides = [1, 1]} : vector<16x128xf32> to vector<1x128xf32>
    %132 = tpu.concatenate %130, %131 in 0 : vector<15x128xf32>, vector<1x128xf32> -> vector<16x128xf32>
    %133 = vector.extract_strided_slice %108 {offsets = [16, 0], sizes = [16, 128], strides = [1, 1]} : vector<32x128xf32> to vector<16x128xf32>
    %134 = vector.extract_strided_slice %133 {offsets = [1, 0], sizes = [15, 128], strides = [1, 1]} : vector<16x128xf32> to vector<15x128xf32>
    %135 = vector.extract_strided_slice %133 {offsets = [15, 0], sizes = [1, 128], strides = [1, 1]} : vector<16x128xf32> to vector<1x128xf32>
    %136 = tpu.concatenate %134, %135 in 0 : vector<15x128xf32>, vector<1x128xf32> -> vector<16x128xf32>
    %137 = tpu.concatenate %132, %136 in 0 : vector<16x128xf32>, vector<16x128xf32> -> vector<32x128xf32>
    %138 = arith.index_cast %c2_i32 : i32 to index
    %c2_45 = arith.constant 2 : index
    %c0_46 = arith.constant 0 : index
    %c0_47 = arith.constant 0 : index
    %139 = vector.load %arg3[%138, %c2_45, %c0_46, %c0_47] : memref<4x3x128x128xbf16, #tpu.memory_space<vmem>>, vector<1x1x128x128xbf16>
    %140 = vector.shape_cast %139 : vector<1x1x128x128xbf16> to vector<128x128xbf16>
    %141 = arith.truncf %137 : vector<32x128xf32> to vector<32x128xbf16>
    %cst_48 = arith.constant dense<0.000000e+00> : vector<32x128xf32>
    %142 = tpu.matmul %141, %140, %cst_48 {dimension_numbers = #tpu.dot_dimension_numbers<[1], [0], [0], [1], [0, 0, 1, 1], [], []>} : vector<32x128xbf16>, vector<128x128xbf16>, vector<32x128xf32> -> vector<32x128xf32>
    %143 = arith.addf %128, %142 : vector<32x128xf32>
    %cst_49 = arith.constant 0.000000e+00 : f32
    %144 = vector.broadcast %cst_49 : f32 to vector<32x128xf32>
    %145 = arith.maximumf %143, %144 : vector<32x128xf32>
    %c3_i32 = arith.constant 3 : i32
    %146 = vector.extract_strided_slice %145 {offsets = [0, 0], sizes = [16, 128], strides = [1, 1]} : vector<32x128xf32> to vector<16x128xf32>
    %147 = vector.extract_strided_slice %146 {offsets = [0, 0], sizes = [1, 128], strides = [1, 1]} : vector<16x128xf32> to vector<1x128xf32>
    %148 = vector.extract_strided_slice %146 {offsets = [0, 0], sizes = [15, 128], strides = [1, 1]} : vector<16x128xf32> to vector<15x128xf32>
    %149 = tpu.concatenate %147, %148 in 0 : vector<1x128xf32>, vector<15x128xf32> -> vector<16x128xf32>
    %150 = vector.extract_strided_slice %145 {offsets = [16, 0], sizes = [16, 128], strides = [1, 1]} : vector<32x128xf32> to vector<16x128xf32>
    %151 = vector.extract_strided_slice %150 {offsets = [0, 0], sizes = [1, 128], strides = [1, 1]} : vector<16x128xf32> to vector<1x128xf32>
    %152 = vector.extract_strided_slice %150 {offsets = [0, 0], sizes = [15, 128], strides = [1, 1]} : vector<16x128xf32> to vector<15x128xf32>
    %153 = tpu.concatenate %151, %152 in 0 : vector<1x128xf32>, vector<15x128xf32> -> vector<16x128xf32>
    %154 = tpu.concatenate %149, %153 in 0 : vector<16x128xf32>, vector<16x128xf32> -> vector<32x128xf32>
    %155 = arith.index_cast %c3_i32 : i32 to index
    %c0_50 = arith.constant 0 : index
    %c0_51 = arith.constant 0 : index
    %c0_52 = arith.constant 0 : index
    %156 = vector.load %arg3[%155, %c0_50, %c0_51, %c0_52] : memref<4x3x128x128xbf16, #tpu.memory_space<vmem>>, vector<1x1x128x128xbf16>
    %157 = vector.shape_cast %156 : vector<1x1x128x128xbf16> to vector<128x128xbf16>
    %158 = arith.truncf %154 : vector<32x128xf32> to vector<32x128xbf16>
    %cst_53 = arith.constant dense<0.000000e+00> : vector<32x128xf32>
    %159 = tpu.matmul %158, %157, %cst_53 {dimension_numbers = #tpu.dot_dimension_numbers<[1], [0], [0], [1], [0, 0, 1, 1], [], []>} : vector<32x128xbf16>, vector<128x128xbf16>, vector<32x128xf32> -> vector<32x128xf32>
    %160 = arith.index_cast %c3_i32 : i32 to index
    %c1_54 = arith.constant 1 : index
    %c0_55 = arith.constant 0 : index
    %c0_56 = arith.constant 0 : index
    %161 = vector.load %arg3[%160, %c1_54, %c0_55, %c0_56] : memref<4x3x128x128xbf16, #tpu.memory_space<vmem>>, vector<1x1x128x128xbf16>
    %162 = vector.shape_cast %161 : vector<1x1x128x128xbf16> to vector<128x128xbf16>
    %163 = arith.truncf %145 : vector<32x128xf32> to vector<32x128xbf16>
    %cst_57 = arith.constant dense<0.000000e+00> : vector<32x128xf32>
    %164 = tpu.matmul %163, %162, %cst_57 {dimension_numbers = #tpu.dot_dimension_numbers<[1], [0], [0], [1], [0, 0, 1, 1], [], []>} : vector<32x128xbf16>, vector<128x128xbf16>, vector<32x128xf32> -> vector<32x128xf32>
    %165 = arith.addf %159, %164 : vector<32x128xf32>
    %166 = vector.extract_strided_slice %145 {offsets = [0, 0], sizes = [16, 128], strides = [1, 1]} : vector<32x128xf32> to vector<16x128xf32>
    %167 = vector.extract_strided_slice %166 {offsets = [1, 0], sizes = [15, 128], strides = [1, 1]} : vector<16x128xf32> to vector<15x128xf32>
    %168 = vector.extract_strided_slice %166 {offsets = [15, 0], sizes = [1, 128], strides = [1, 1]} : vector<16x128xf32> to vector<1x128xf32>
    %169 = tpu.concatenate %167, %168 in 0 : vector<15x128xf32>, vector<1x128xf32> -> vector<16x128xf32>
    %170 = vector.extract_strided_slice %145 {offsets = [16, 0], sizes = [16, 128], strides = [1, 1]} : vector<32x128xf32> to vector<16x128xf32>
    %171 = vector.extract_strided_slice %170 {offsets = [1, 0], sizes = [15, 128], strides = [1, 1]} : vector<16x128xf32> to vector<15x128xf32>
    %172 = vector.extract_strided_slice %170 {offsets = [15, 0], sizes = [1, 128], strides = [1, 1]} : vector<16x128xf32> to vector<1x128xf32>
    %173 = tpu.concatenate %171, %172 in 0 : vector<15x128xf32>, vector<1x128xf32> -> vector<16x128xf32>
    %174 = tpu.concatenate %169, %173 in 0 : vector<16x128xf32>, vector<16x128xf32> -> vector<32x128xf32>
    %175 = arith.index_cast %c3_i32 : i32 to index
    %c2_58 = arith.constant 2 : index
    %c0_59 = arith.constant 0 : index
    %c0_60 = arith.constant 0 : index
    %176 = vector.load %arg3[%175, %c2_58, %c0_59, %c0_60] : memref<4x3x128x128xbf16, #tpu.memory_space<vmem>>, vector<1x1x128x128xbf16>
    %177 = vector.shape_cast %176 : vector<1x1x128x128xbf16> to vector<128x128xbf16>
    %178 = arith.truncf %174 : vector<32x128xf32> to vector<32x128xbf16>
    %cst_61 = arith.constant dense<0.000000e+00> : vector<32x128xf32>
    %179 = tpu.matmul %178, %177, %cst_61 {dimension_numbers = #tpu.dot_dimension_numbers<[1], [0], [0], [1], [0, 0, 1, 1], [], []>} : vector<32x128xbf16>, vector<128x128xbf16>, vector<32x128xf32> -> vector<32x128xf32>
    %180 = arith.addf %165, %179 : vector<32x128xf32>
    %cst_62 = arith.constant 0.000000e+00 : f32
    %181 = vector.broadcast %cst_62 : f32 to vector<32x128xf32>
    %182 = arith.maximumf %180, %181 : vector<32x128xf32>
    %c4_i32 = arith.constant 4 : i32
    %183 = vector.extract_strided_slice %182 {offsets = [0, 0], sizes = [16, 128], strides = [1, 1]} : vector<32x128xf32> to vector<16x128xf32>
    %184 = vector.extract_strided_slice %183 {offsets = [0, 0], sizes = [1, 128], strides = [1, 1]} : vector<16x128xf32> to vector<1x128xf32>
    %185 = vector.extract_strided_slice %183 {offsets = [0, 0], sizes = [15, 128], strides = [1, 1]} : vector<16x128xf32> to vector<15x128xf32>
    %186 = tpu.concatenate %184, %185 in 0 : vector<1x128xf32>, vector<15x128xf32> -> vector<16x128xf32>
    %187 = vector.extract_strided_slice %182 {offsets = [16, 0], sizes = [16, 128], strides = [1, 1]} : vector<32x128xf32> to vector<16x128xf32>
    %188 = vector.extract_strided_slice %187 {offsets = [0, 0], sizes = [1, 128], strides = [1, 1]} : vector<16x128xf32> to vector<1x128xf32>
    %189 = vector.extract_strided_slice %187 {offsets = [0, 0], sizes = [15, 128], strides = [1, 1]} : vector<16x128xf32> to vector<15x128xf32>
    %190 = tpu.concatenate %188, %189 in 0 : vector<1x128xf32>, vector<15x128xf32> -> vector<16x128xf32>
    %191 = tpu.concatenate %186, %190 in 0 : vector<16x128xf32>, vector<16x128xf32> -> vector<32x128xf32>
    %c0_63 = arith.constant 0 : index
    %c0_64 = arith.constant 0 : index
    %c0_65 = arith.constant 0 : index
    %192 = vector.load %arg4[%c0_63, %c0_64, %c0_65] : memref<3x128x128xbf16, #tpu.memory_space<vmem>>, vector<1x128x128xbf16>
    %193 = vector.shape_cast %192 : vector<1x128x128xbf16> to vector<128x128xbf16>
    %194 = arith.truncf %191 : vector<32x128xf32> to vector<32x128xbf16>
    %cst_66 = arith.constant dense<0.000000e+00> : vector<32x128xf32>
    %195 = tpu.matmul %194, %193, %cst_66 {dimension_numbers = #tpu.dot_dimension_numbers<[1], [0], [0], [1], [0, 0, 1, 1], [], []>} : vector<32x128xbf16>, vector<128x128xbf16>, vector<32x128xf32> -> vector<32x128xf32>
    %c1_67 = arith.constant 1 : index
    %c0_68 = arith.constant 0 : index
    %c0_69 = arith.constant 0 : index
    %196 = vector.load %arg4[%c1_67, %c0_68, %c0_69] : memref<3x128x128xbf16, #tpu.memory_space<vmem>>, vector<1x128x128xbf16>
    %197 = vector.shape_cast %196 : vector<1x128x128xbf16> to vector<128x128xbf16>
    %198 = arith.truncf %182 : vector<32x128xf32> to vector<32x128xbf16>
    %cst_70 = arith.constant dense<0.000000e+00> : vector<32x128xf32>
    %199 = tpu.matmul %198, %197, %cst_70 {dimension_numbers = #tpu.dot_dimension_numbers<[1], [0], [0], [1], [0, 0, 1, 1], [], []>} : vector<32x128xbf16>, vector<128x128xbf16>, vector<32x128xf32> -> vector<32x128xf32>
    %200 = arith.addf %195, %199 : vector<32x128xf32>
    %201 = vector.extract_strided_slice %182 {offsets = [0, 0], sizes = [16, 128], strides = [1, 1]} : vector<32x128xf32> to vector<16x128xf32>
    %202 = vector.extract_strided_slice %201 {offsets = [1, 0], sizes = [15, 128], strides = [1, 1]} : vector<16x128xf32> to vector<15x128xf32>
    %203 = vector.extract_strided_slice %201 {offsets = [15, 0], sizes = [1, 128], strides = [1, 1]} : vector<16x128xf32> to vector<1x128xf32>
    %204 = tpu.concatenate %202, %203 in 0 : vector<15x128xf32>, vector<1x128xf32> -> vector<16x128xf32>
    %205 = vector.extract_strided_slice %182 {offsets = [16, 0], sizes = [16, 128], strides = [1, 1]} : vector<32x128xf32> to vector<16x128xf32>
    %206 = vector.extract_strided_slice %205 {offsets = [1, 0], sizes = [15, 128], strides = [1, 1]} : vector<16x128xf32> to vector<15x128xf32>
    %207 = vector.extract_strided_slice %205 {offsets = [15, 0], sizes = [1, 128], strides = [1, 1]} : vector<16x128xf32> to vector<1x128xf32>
    %208 = tpu.concatenate %206, %207 in 0 : vector<15x128xf32>, vector<1x128xf32> -> vector<16x128xf32>
    %209 = tpu.concatenate %204, %208 in 0 : vector<16x128xf32>, vector<16x128xf32> -> vector<32x128xf32>
    %c2_71 = arith.constant 2 : index
    %c0_72 = arith.constant 0 : index
    %c0_73 = arith.constant 0 : index
    %210 = vector.load %arg4[%c2_71, %c0_72, %c0_73] : memref<3x128x128xbf16, #tpu.memory_space<vmem>>, vector<1x128x128xbf16>
    %211 = vector.shape_cast %210 : vector<1x128x128xbf16> to vector<128x128xbf16>
    %212 = arith.truncf %209 : vector<32x128xf32> to vector<32x128xbf16>
    %cst_74 = arith.constant dense<0.000000e+00> : vector<32x128xf32>
    %213 = tpu.matmul %212, %211, %cst_74 {dimension_numbers = #tpu.dot_dimension_numbers<[1], [0], [0], [1], [0, 0, 1, 1], [], []>} : vector<32x128xbf16>, vector<128x128xbf16>, vector<32x128xf32> -> vector<32x128xf32>
    %214 = arith.addf %200, %213 : vector<32x128xf32>
    %cst_75 = arith.constant 0.000000e+00 : f32
    %215 = vector.broadcast %cst_75 : f32 to vector<32x128xf32>
    %216 = arith.maximumf %214, %215 : vector<32x128xf32>
    %c0_76 = arith.constant 0 : index
    %c0_77 = arith.constant 0 : index
    %217 = vector.load %arg5[%c0_76, %c0_77] : memref<32x128xf32, #tpu.memory_space<vmem>>, vector<32x128xf32>
    tpu.vector_store %arg5[%c0_76, %c0_77], %216 {strides = array<i32>} : memref<32x128xf32, #tpu.memory_space<vmem>>, vector<32x128xf32>,
    return
  }
  func.func @transform_0(%arg0: i32) -> (i32, i32) {
    %c0_i32 = arith.constant 0 : i32
    %c0_i32_0 = arith.constant 0 : i32
    %c0_i32_1 = arith.constant 0 : i32
    return %c0_i32, %c0_i32_0 : i32, i32
  }
  func.func @transform_1(%arg0: i32) -> (i32, i32, i32) {
    %c0_i32 = arith.constant 0 : i32
    %c0_i32_0 = arith.constant 0 : i32
    %c0_i32_1 = arith.constant 0 : i32
    %c0_i32_2 = arith.constant 0 : i32
    return %c0_i32, %c0_i32_0, %c0_i32_1 : i32, i32, i32
  }
  func.func @transform_2(%arg0: i32) -> (i32, i32, i32, i32) {
    %c0_i32 = arith.constant 0 : i32
    %c0_i32_0 = arith.constant 0 : i32
    %c0_i32_1 = arith.constant 0 : i32
    %c0_i32_2 = arith.constant 0 : i32
    %c0_i32_3 = arith.constant 0 : i32
    return %c0_i32, %c0_i32_0, %c0_i32_1, %c0_i32_2 : i32, i32, i32, i32
  }
  func.func @transform_3(%arg0: i32) -> (i32, i32, i32) {
    %c0_i32 = arith.constant 0 : i32
    %c0_i32_0 = arith.constant 0 : i32
    %c0_i32_1 = arith.constant 0 : i32
    %c0_i32_2 = arith.constant 0 : i32
    return %c0_i32, %c0_i32_0, %c0_i32_1 : i32, i32, i32
  }
  func.func @transform_4(%arg0: i32) -> (i32, i32) {
    %c0_i32 = arith.constant 0 : i32
    %c0_i32_0 = arith.constant 0 : i32
    %c0_i32_1 = arith.constant 0 : i32
    return %c0_i32, %c0_i32_0 : i32, i32
  }
}

</mosaic_0001>

<bundles_post_ra>
// kernel: dec_conv_forward.1
= control target key start
LH: loop header
LB: loop body
LE: loop exit
PB: predicated region body
PF: predicated region fallthrough
CT: control target
= control target key end

     0   :  { %vm24_vm0 = vcmask 1040384   ;;  %vm270_vm1 = vcmask 1046528   ;;  %s4008_s1 = inlined_call_operand.vmem [shape: bf16[3,128,128], index: 1, kind: input, shape index: {}]   ;;  %s4009_s0 = inlined_call_operand.vmem [shape: f32[32,128], index: 0, kind: input, shape index: {}]   ;;  %s4010_s2 = inlined_call_operand.vmem [shape: bf16[4,3,128,128], index: 2, kind: input, shape index: {}]   ;;  %s4011_s3 = inlined_call_operand.vmem [shape: bf16[3,128,128], index: 3, kind: input, shape index: {}]   ;;  %s4012_s4 = inlined_call_operand.vmem [shape: f32[32,128], index: 4, kind: output, shape index: {}]  }
   0x1   :  { %v3305_v0 = vld [vmem:[%s4008_s1 + $0x40] sm:$0xff]   ;;  %v3306_v1 = vld [vmem:[%s4008_s1 + $0x48] sm:$0xff]   ;;  %v3307_v2 = vld [vmem:[%s4008_s1 + $0x50] sm:$0xff]  }
   0x2   :  { %2897 = vmatprep.subr.bf16.mxu0 %v3305_v0  ;;  %v3308_v3 = vld [vmem:[%s4008_s1 + $0x58] sm:$0xff]   ;;  %v3489_v4 = vld [vmem:[%s4009_s0] sm:$0xff]  ;;  %v3494_v5 = vld [vmem:[%s4009_s0 + $0x8] sm:$0xff] }
   0x3   :  { %2898 = vmatpush3.bf16.msra.mxu0 %v3305_v0  ;;  %v74_v6 = vpack.c.bf16 %v3494_v5, %v3489_v4  ;;  %v3309_v7 = vld [vmem:[%s4008_s1 + $0x60] sm:$0xff]   ;;  %v3310_v8 = vld [vmem:[%s4008_s1 + $0x68] sm:$0xff]   ;;  %v3311_v9 = vld [vmem:[%s4008_s1 + $0x70] sm:$0xff]   ;;  %v25_v11 = vrot.slane %v3489_v4, 7  ;;  %v26_v12 = vrot.slane %v3494_v5, 7  ;;  %v271_v16 = vrot.slane %v3489_v4, 1 }
   0x4   :  { %2899 = vmatprep.subr.bf16.mxu0 %v3306_v1  ;;  %v3312_v10 = vld [vmem:[%s4008_s1 + $0x78] sm:$0xff]   ;;  %v3515_v13 = vld [vmem:[%s4009_s0 + $0x10] sm:$0xff]  ;;  %v3329_v15 = vld [vmem:[%s4010_s2 + $0x40] sm:$0xff]   ;;  %v272_v18 = vrot.slane %v3494_v5, 1 }
   0x5   :  { %2913 = vmatprep.mubr.bf16.mxu0 %v74_v6  ;;  %v3520_v14 = vld [vmem:[%s4009_s0 + $0x18] sm:$0xff]  ;;  %v3330_v17 = vld [vmem:[%s4010_s2 + $0x48] sm:$0xff]   ;;  %v3313_v19 = vld [vmem:[%s4008_s1] sm:$0xff]   ;;  %v27_v20 = vsel %vm24_vm0, %v25_v11, %v26_v12  ;;  %v30_v21 = vsel %vm24_vm0, %v3489_v4, %v25_v11  ;;  %2957 = vmatprep.subr.bf16.mxu1 %v3329_v15  ;;  %v33_v22 = vrot.slane %v3515_v13, 7  ;;  %v277_v25 = vrot.slane %v3515_v13, 1 }
   0x6   :  { %v34_v23 = vrot.slane %v3520_v14, 7  ;;  %2958 = vmatpush3.bf16.msra.mxu1 %v3329_v15  ;;  %v75_v24 = vpack.c.bf16 %v3520_v14, %v3515_v13  ;;  %v3331_v26 = vld [vmem:[%s4010_s2 + $0x50] sm:$0xff]   ;;  %v278_v27 = vrot.slane %v3520_v14, 1  ;;  %v3314_v28 = vld [vmem:[%s4008_s1 + $0x8] sm:$0xff]   ;;  %v55_v29 = vpack.c.bf16 %v27_v20, %v30_v21  ;;  %v3332_v30 = vld [vmem:[%s4010_s2 + $0x58] sm:$0xff]  }
   0x7   :  { %2900 = vmatpush3.bf16.msra.mxu0 %v3306_v1  ;;  %2959 = vmatprep.subr.bf16.mxu1 %v3330_v17  ;;  %v3315_v31 = vld [vmem:[%s4008_s1 + $0x10] sm:$0xff]   ;;  %v3333_v32 = vld [vmem:[%s4010_s2 + $0x60] sm:$0xff]   ;;  %v3316_v33 = vld [vmem:[%s4008_s1 + $0x18] sm:$0xff]   ;;  %v38_v41 = vsel %vm24_vm0, %v3515_v13, %v33_v22  ;;  %v273_v42 = vsel %vm270_vm1, %v271_v16, %v272_v18  ;;  %v276_v43 = vsel %vm270_vm1, %v272_v18, %v3494_v5 }
   0x8   :  { %2901 = vmatprep.subr.bf16.mxu0 %v3307_v2  ;;  %v3334_v34 = vld [vmem:[%s4010_s2 + $0x68] sm:$0xff]   ;;  %v3317_v35 = vld [vmem:[%s4008_s1 + $0x20] sm:$0xff]   ;;  %v3319_v37 = vld [vmem:[%s4008_s1 + $0x30] sm:$0xff]   ;;  %v35_v40 = vsel %vm24_vm0, %v33_v22, %v34_v23  ;;  %v300_v46 = vpack.c.bf16 %v276_v43, %v273_v42  ;;  %v279_v53 = vsel %vm270_vm1, %v277_v25, %v278_v27  ;;  %v282_v54 = vsel %vm270_vm1, %v278_v27, %v3520_v14 }
   0x9   :  { %v3318_v36 = vld [vmem:[%s4008_s1 + $0x28] sm:$0xff]   ;;  %v3320_v38 = vld [vmem:[%s4008_s1 + $0x38] sm:$0xff]   ;;  %v3321_v39 = vld [vmem:[%s4008_s1 + $0x80] sm:$0xff]   ;;  %v56_v44 = vpack.c.bf16 %v35_v40, %v38_v41  ;;  %v301_v55 = vpack.c.bf16 %v282_v54, %v279_v53 }
   0xa   :  { %2960 = vmatpush3.bf16.msra.mxu1 %v3330_v17  ;;  %v3322_v45 = vld [vmem:[%s4008_s1 + $0x88] sm:$0xff]   ;;  %v3323_v47 = vld [vmem:[%s4008_s1 + $0x90] sm:$0xff]   ;;  %v3324_v48 = vld [vmem:[%s4008_s1 + $0x98] sm:$0xff]  }
   0xb   :  { %2902 = vmatpush3.bf16.msra.mxu0 %v3307_v2  ;;  %2961 = vmatprep.subr.bf16.mxu1 %v3331_v26  ;;  %v3325_v49 = vld [vmem:[%s4008_s1 + $0xa0] sm:$0xff]   ;;  %v3326_v50 = vld [vmem:[%s4008_s1 + $0xa8] sm:$0xff]   ;;  %v3327_v51 = vld [vmem:[%s4008_s1 + $0xb0] sm:$0xff]  }
   0xc   :  { %2903 = vmatprep.subr.bf16.mxu0 %v3308_v3  ;;  %v3328_v52 = vld [vmem:[%s4008_s1 + $0xb8] sm:$0xff]   ;;  %v3335_v56 = vld [vmem:[%s4010_s2 + $0x70] sm:$0xff]   ;;  %v3337_v58 = vld [vmem:[%s4010_s2] sm:$0xff]  }
   0xd   :  { %v3336_v57 = vld [vmem:[%s4010_s2 + $0x78] sm:$0xff]   ;;  %v3353_v59 = vld [vmem:[%s4010_s2 + $0x100] sm:$0xff]   ;;  %v3354_v60 = vld [vmem:[%s4010_s2 + $0x108] sm:$0xff]  }
   0xe   :  { %2962 = vmatpush3.bf16.msra.mxu1 %v3331_v26  ;;  %v3355_v61 = vld [vmem:[%s4010_s2 + $0x110] sm:$0xff]   ;;  %v3356_v62 = vld [vmem:[%s4010_s2 + $0x118] sm:$0xff]   ;;  %v3357_v63 = vld [vmem:[%s4010_s2 + $0x120] sm:$0xff]  }
   0xf   :  { %2904 = vmatpush3.bf16.msra.mxu0 %v3308_v3  ;;  %2963 = vmatprep.subr.bf16.mxu1 %v3332_v30  ;;  %v3358_v0 = vld [vmem:[%s4010_s2 + $0x128] sm:$0xff]   ;;  %v3347_v40 = vld [vmem:[%s4010_s2 + $0x90] sm:$0xff]   ;;  %v3348_v41 = vld [vmem:[%s4010_s2 + $0x98] sm:$0xff]  }
  0x10   :  { %2905 = vmatprep.subr.bf16.mxu0 %v3309_v7  ;;  %v3338_v21 = vld [vmem:[%s4010_s2 + $0x8] sm:$0xff]   ;;  %v3349_v42 = vld [vmem:[%s4010_s2 + $0xa0] sm:$0xff]  }
  0x11   :  { %v3350_v43 = vld [vmem:[%s4010_s2 + $0xa8] sm:$0xff]   ;;  %v3381_v53 = vld [vmem:[%s4010_s2 + $0x1e0] sm:$0xff]  }
  0x12   :  { %2964 = vmatpush3.bf16.msra.mxu1 %v3332_v30  ;;  %v3382_v54 = vld [vmem:[%s4010_s2 + $0x1e8] sm:$0xff]  }
  0x13   :  { %2906 = vmatpush3.bf16.msra.mxu0 %v3309_v7  ;;  %2965 = vmatprep.subr.bf16.mxu1 %v3333_v32 }
  0x14   :  { %2907 = vmatprep.subr.bf16.mxu0 %v3310_v8 }
  0x16   :  { %2966 = vmatpush3.bf16.msra.mxu1 %v3333_v32  ;;  %v3339_v32 = vld [vmem:[%s4010_s2 + $0x10] sm:$0xff]  }
  0x17   :  { %2908 = vmatpush3.bf16.msra.mxu0 %v3310_v8  ;;  %2967 = vmatprep.subr.bf16.mxu1 %v3334_v34 }
  0x18   :  { %2909 = vmatprep.subr.bf16.mxu0 %v3311_v9 }
  0x1a   :  { %2968 = vmatpush3.bf16.msra.mxu1 %v3334_v34  ;;  %v3341_v34 = vld [vmem:[%s4010_s2 + $0x20] sm:$0xff]  }
  0x1b   :  { %2910 = vmatpush3.bf16.msra.mxu0 %v3311_v9  ;;  %2969 = vmatprep.subr.bf16.mxu1 %v3335_v56 }
  0x1c   :  { %2911 = vmatprep.subr.bf16.mxu0 %v3312_v10 }
  0x1e   :  { %2970 = vmatpush3.bf16.msra.mxu1 %v3335_v56 }
  0x1f   :  { %2912 = vmatpush3.bf16.msra.mxu0 %v3312_v10  ;;  %2971 = vmatprep.subr.bf16.mxu1 %v3336_v57 }
  0x20   :  { %2917 = vmatprep.subr.bf16.mxu0 %v3313_v19 }
  0x22   :  { %2914 = vmatmul.mubr.bf16.vlgmr.msra.gmra.mrb[0].mxu0 %v75_v24  ;;  %2972 = vmatpush3.bf16.msra.mxu1 %v3336_v57 }
  0x23   :  { %2918 = vmatpush3.bf16.msra.mxu0 %v3313_v19  ;;  %2933 = vmatprep.mubr.bf16.mxu0 %v55_v29 }
  0x24   :  { %2919 = vmatprep.subr.bf16.mxu0 %v3314_v28  ;;  %2977 = vmatprep.subr.bf16.mxu1 %v3337_v58 }
  0x27   :  { %2920 = vmatpush3.bf16.msra.mxu0 %v3314_v28 }
  0x28   :  { %2921 = vmatprep.subr.bf16.mxu0 %v3315_v31 }
  0x2b   :  { %2922 = vmatpush3.bf16.msra.mxu0 %v3315_v31 }
  0x2c   :  { %2923 = vmatprep.subr.bf16.mxu0 %v3316_v33 }
  0x2f   :  { %2924 = vmatpush3.bf16.msra.mxu0 %v3316_v33  ;;  %v3340_v33 = vld [vmem:[%s4010_s2 + $0x18] sm:$0xff]  }
  0x30   :  { %2925 = vmatprep.subr.bf16.mxu0 %v3317_v35 }
  0x33   :  { %2926 = vmatpush3.bf16.msra.mxu0 %v3317_v35  ;;  %v3342_v35 = vld [vmem:[%s4010_s2 + $0x28] sm:$0xff]  }
  0x34   :  { %2927 = vmatprep.subr.bf16.mxu0 %v3318_v36 }
  0x37   :  { %2928 = vmatpush3.bf16.msra.mxu0 %v3318_v36  ;;  %v3343_v36 = vld [vmem:[%s4010_s2 + $0x30] sm:$0xff]  }
  0x38   :  { %2929 = vmatprep.subr.bf16.mxu0 %v3319_v37 }
  0x3b   :  { %2930 = vmatpush3.bf16.msra.mxu0 %v3319_v37  ;;  %v3344_v37 = vld [vmem:[%s4010_s2 + $0x38] sm:$0xff]  }
  0x3c   :  { %2931 = vmatprep.subr.bf16.mxu0 %v3320_v38 }
  0x3f   :  { %2932 = vmatpush3.bf16.msra.mxu0 %v3320_v38  ;;  %v3345_v38 = vld [vmem:[%s4010_s2 + $0x80] sm:$0xff]  }
  0x40   :  { %2937 = vmatprep.subr.bf16.mxu0 %v3321_v39 }
  0x42   :  { %2934 = vmatmul.mubr.bf16.vlgmr.msra.gmra.mrb[0].mxu0 %v56_v44  ;;  %v3351_v44 = vld [vmem:[%s4010_s2 + $0xb0] sm:$0xff]  }
  0x43   :  { %2938 = vmatpush3.bf16.msra.mxu0 %v3321_v39  ;;  %2953 = vmatprep.mubr.bf16.mxu0 %v300_v46  ;;  %v3346_v39 = vld [vmem:[%s4010_s2 + $0x88] sm:$0xff]   ;;  %v3359_v46 = vld [vmem:[%s4010_s2 + $0x130] sm:$0xff]  }
  0x44   :  { %2939 = vmatprep.subr.bf16.mxu0 %v3322_v45 }
  0x47   :  { %2940 = vmatpush3.bf16.msra.mxu0 %v3322_v45  ;;  %v3352_v45 = vld [vmem:[%s4010_s2 + $0xb8] sm:$0xff]  }
  0x48   :  { %2941 = vmatprep.subr.bf16.mxu0 %v3323_v47 }
  0x4b   :  { %2942 = vmatpush3.bf16.msra.mxu0 %v3323_v47  ;;  %v3360_v47 = vld [vmem:[%s4010_s2 + $0x138] sm:$0xff]  }
  0x4c   :  { %2943 = vmatprep.subr.bf16.mxu0 %v3324_v48 }
  0x4f   :  { %2944 = vmatpush3.bf16.msra.mxu0 %v3324_v48  ;;  %v3361_v48 = vld [vmem:[%s4010_s2 + $0xc0] sm:$0xff]  }
  0x50   :  { %2945 = vmatprep.subr.bf16.mxu0 %v3325_v49 }
  0x53   :  { %2946 = vmatpush3.bf16.msra.mxu0 %v3325_v49  ;;  %v3377_v49 = vld [vmem:[%s4010_s2 + $0x1c0] sm:$0xff]  }
  0x54   :  { %2947 = vmatprep.subr.bf16.mxu0 %v3326_v50 }
  0x57   :  { %2948 = vmatpush3.bf16.msra.mxu0 %v3326_v50  ;;  %v3378_v50 = vld [vmem:[%s4010_s2 + $0x1c8] sm:$0xff]  }
  0x58   :  { %2949 = vmatprep.subr.bf16.mxu0 %v3327_v51 }
  0x5b   :  { %2950 = vmatpush3.bf16.msra.mxu0 %v3327_v51  ;;  %v3379_v51 = vld [vmem:[%s4010_s2 + $0x1d0] sm:$0xff]  }
  0x5c   :  { %2951 = vmatprep.subr.bf16.mxu0 %v3328_v52 }
  0x5f   :  { %2952 = vmatpush3.bf16.msra.mxu0 %v3328_v52  ;;  %v3380_v52 = vld [vmem:[%s4010_s2 + $0x1d8] sm:$0xff]  }
  0x60   :  { %3017 = vmatprep.subr.bf16.mxu0 %v3353_v59 }
  0x62   :  { %2954 = vmatmul.mubr.bf16.vlgmr.msra.gmra.mrb[0].mxu0 %v301_v55 }
  0x63   :  { %3018 = vmatpush3.bf16.msra.mxu0 %v3353_v59 }
  0x64   :  { %3019 = vmatprep.subr.bf16.mxu0 %v3354_v60 }
  0x67   :  { %3020 = vmatpush3.bf16.msra.mxu0 %v3354_v60 }
  0x68   :  { %3021 = vmatprep.subr.bf16.mxu0 %v3355_v61 }
  0x6b   :  { %3022 = vmatpush3.bf16.msra.mxu0 %v3355_v61 }
  0x6c   :  { %3023 = vmatprep.subr.bf16.mxu0 %v3356_v62 }
  0x6f   :  { %3024 = vmatpush3.bf16.msra.mxu0 %v3356_v62 }
  0x70   :  { %3025 = vmatprep.subr.bf16.mxu0 %v3357_v63 }
  0x73   :  { %3026 = vmatpush3.bf16.msra.mxu0 %v3357_v63 }
  0x74   :  { %3027 = vmatprep.subr.bf16.mxu0 %v3358_v0 }
  0x77   :  { %3028 = vmatpush3.bf16.msra.mxu0 %v3358_v0 }
  0x78   :  { %3029 = vmatprep.subr.bf16.mxu0 %v3359_v46 }
  0x7b   :  { %3030 = vmatpush3.bf16.msra.mxu0 %v3359_v46 }
  0x7c   :  { %3031 = vmatprep.subr.bf16.mxu0 %v3360_v47 }
  0x7f   :  { %3032 = vmatpush3.bf16.msra.mxu0 %v3360_v47 }
  0x80   :  { %3037 = vmatprep.subr.bf16.mxu0 %v3361_v48 }
 0x135   :  { %v2955_v1 = vpop.f32.mrb[0].mxu0 }
 0x136   :  { %v405_v2 = vmax.f32 %v2955_v1, 0.0  ;;  %v384_v3 = vpop.f32.mrb[1].mxu0 }
 0x137   :  { %v403_v4 = vmax.f32 %v384_v3, 0.0  ;;  %v2956_v5 = vpop.f32.mrb[2].mxu0 }
 0x138   :  { %v417_v6 = vrot.slane %v405_v2, 7  ;;  %v406_v7 = vmax.f32 %v2956_v5, 0.0  ;;  %v387_v8 = vpop.f32.mrb[3].mxu0  ;;  %v660_v9 = vrot.slane %v405_v2, 1 }
 0x139   :  { %v409_v10 = vrot.slane %v403_v4, 7  ;;  %v404_v11 = vmax.f32 %v387_v8, 0.0  ;;  %v654_v12 = vrot.slane %v403_v4, 1 }
 0x13a   :  { %v418_v13 = vrot.slane %v406_v7, 7  ;;  %v661_v14 = vrot.slane %v406_v7, 1  ;;  %v459_v15 = vpack.c.bf16 %v406_v7, %v405_v2  ;;  %v422_v19 = vsel %vm24_vm0, %v405_v2, %v417_v6 }
 0x13b   :  { %v410_v16 = vrot.slane %v404_v11, 7  ;;  %v655_v17 = vrot.slane %v404_v11, 1  ;;  %v458_v18 = vpack.c.bf16 %v404_v11, %v403_v4  ;;  %v414_v20 = vsel %vm24_vm0, %v403_v4, %v409_v10 }
 0x13c   :  { %v419_v22 = vsel %vm24_vm0, %v417_v6, %v418_v13  ;;  %v662_v23 = vsel %vm270_vm1, %v660_v9, %v661_v14  ;;  %v665_v24 = vsel %vm270_vm1, %v661_v14, %v406_v7 }
 0x13d   :  { %2973 = vmatprep.mubr.bf16.mxu1 %v458_v18  ;;  %v411_v25 = vsel %vm24_vm0, %v409_v10, %v410_v16  ;;  %v440_v26 = vpack.c.bf16 %v419_v22, %v422_v19  ;;  %v656_v27 = vsel %vm270_vm1, %v654_v12, %v655_v17  ;;  %v659_v28 = vsel %vm270_vm1, %v655_v17, %v404_v11  ;;  %v3362_v11 = vld [vmem:[%s4010_s2 + $0xc8] sm:$0xff]   ;;  %v3363_v22 = vld [vmem:[%s4010_s2 + $0xd0] sm:$0xff]  }
 0x13e   :  { %2974 = vmatmul.mubr.bf16.vlgmr.msra.gmra.mrb[0].mxu1 %v459_v15  ;;  %v439_v29 = vpack.c.bf16 %v411_v25, %v414_v20  ;;  %v683_v30 = vpack.c.bf16 %v659_v28, %v656_v27  ;;  %v684_v31 = vpack.c.bf16 %v665_v24, %v662_v23  ;;  %v3364_v23 = vld [vmem:[%s4010_s2 + $0xd8] sm:$0xff]   ;;  %v3365_v24 = vld [vmem:[%s4010_s2 + $0xe0] sm:$0xff]   ;;  %v3366_v25 = vld [vmem:[%s4010_s2 + $0xe8] sm:$0xff]  }
 0x13f   :  { %2978 = vmatpush3.bf16.msra.mxu1 %v3337_v58  ;;  %v3368_v27 = vld [vmem:[%s4010_s2 + $0xf8] sm:$0xff]   ;;  %v3369_v28 = vld [vmem:[%s4010_s2 + $0x140] sm:$0xff]  }
 0x140   :  { %2993 = vmatprep.mubr.bf16.mxu1 %v439_v29  ;;  %2979 = vmatprep.subr.bf16.mxu1 %v3338_v21  ;;  %v3370_v29 = vld [vmem:[%s4010_s2 + $0x148] sm:$0xff]  }
 0x143   :  { %2980 = vmatpush3.bf16.msra.mxu1 %v3338_v21 }
 0x144   :  { %2981 = vmatprep.subr.bf16.mxu1 %v3339_v32 }
 0x147   :  { %2982 = vmatpush3.bf16.msra.mxu1 %v3339_v32  ;;  %v3373_v32 = vld [vmem:[%s4010_s2 + $0x160] sm:$0xff]  }
 0x148   :  { %2983 = vmatprep.subr.bf16.mxu1 %v3340_v33 }
 0x14b   :  { %2984 = vmatpush3.bf16.msra.mxu1 %v3340_v33  ;;  %v3374_v33 = vld [vmem:[%s4010_s2 + $0x168] sm:$0xff]  }
 0x14c   :  { %2985 = vmatprep.subr.bf16.mxu1 %v3341_v34 }
 0x14f   :  { %2986 = vmatpush3.bf16.msra.mxu1 %v3341_v34  ;;  %v3375_v34 = vld [vmem:[%s4010_s2 + $0x170] sm:$0xff]  }
 0x150   :  { %2987 = vmatprep.subr.bf16.mxu1 %v3342_v35 }
 0x153   :  { %2988 = vmatpush3.bf16.msra.mxu1 %v3342_v35  ;;  %v3376_v35 = vld [vmem:[%s4010_s2 + $0x178] sm:$0xff]  }
 0x154   :  { %2989 = vmatprep.subr.bf16.mxu1 %v3343_v36 }
 0x157   :  { %2990 = vmatpush3.bf16.msra.mxu1 %v3343_v36  ;;  %v3383_v36 = vld [vmem:[%s4010_s2 + $0x1f0] sm:$0xff]  }
 0x158   :  { %2991 = vmatprep.subr.bf16.mxu1 %v3344_v37 }
 0x15b   :  { %2992 = vmatpush3.bf16.msra.mxu1 %v3344_v37  ;;  %v3384_v37 = vld [vmem:[%s4010_s2 + $0x1f8] sm:$0xff]  }
 0x15c   :  { %2997 = vmatprep.subr.bf16.mxu1 %v3345_v38 }
 0x15e   :  { %2994 = vmatmul.mubr.bf16.vlgmr.msra.gmra.mrb[0].mxu1 %v440_v26  ;;  %v3367_v26 = vld [vmem:[%s4010_s2 + $0xf0] sm:$0xff]  }
 0x15f   :  { %2998 = vmatpush3.bf16.msra.mxu1 %v3345_v38  ;;  %3013 = vmatprep.mubr.bf16.mxu1 %v683_v30  ;;  %v3371_v30 = vld [vmem:[%s4010_s2 + $0x150] sm:$0xff]   ;;  %v3385_v38 = vld [vmem:[%s4010_s2 + $0x180] sm:$0xff]  }
 0x160   :  { %2999 = vmatprep.subr.bf16.mxu1 %v3346_v39 }
 0x163   :  { %3000 = vmatpush3.bf16.msra.mxu1 %v3346_v39  ;;  %v3401_v39 = vld [vmem:[%s4010_s2 + $0x280] sm:$0xff]  }
 0x164   :  { %3001 = vmatprep.subr.bf16.mxu1 %v3347_v40 }
 0x167   :  { %3002 = vmatpush3.bf16.msra.mxu1 %v3347_v40  ;;  %v3402_v40 = vld [vmem:[%s4010_s2 + $0x288] sm:$0xff]  }
 0x168   :  { %3003 = vmatprep.subr.bf16.mxu1 %v3348_v41 }
 0x16b   :  { %3004 = vmatpush3.bf16.msra.mxu1 %v3348_v41  ;;  %v3403_v41 = vld [vmem:[%s4010_s2 + $0x290] sm:$0xff]  }
 0x16c   :  { %3005 = vmatprep.subr.bf16.mxu1 %v3349_v42 }
 0x16f   :  { %3006 = vmatpush3.bf16.msra.mxu1 %v3349_v42  ;;  %v3404_v42 = vld [vmem:[%s4010_s2 + $0x298] sm:$0xff]  }
 0x170   :  { %3007 = vmatprep.subr.bf16.mxu1 %v3350_v43 }
 0x173   :  { %3008 = vmatpush3.bf16.msra.mxu1 %v3350_v43  ;;  %v3405_v43 = vld [vmem:[%s4010_s2 + $0x2a0] sm:$0xff]  }
 0x174   :  { %3009 = vmatprep.subr.bf16.mxu1 %v3351_v44 }
 0x177   :  { %3010 = vmatpush3.bf16.msra.mxu1 %v3351_v44  ;;  %v3406_v44 = vld [vmem:[%s4010_s2 + $0x2a8] sm:$0xff]  }
 0x178   :  { %3011 = vmatprep.subr.bf16.mxu1 %v3352_v45 }
 0x17b   :  { %3012 = vmatpush3.bf16.msra.mxu1 %v3352_v45 }
 0x17c   :  { %3077 = vmatprep.subr.bf16.mxu1 %v3377_v49 }
 0x17e   :  { %3014 = vmatmul.mubr.bf16.vlgmr.msra.gmra.mrb[0].mxu1 %v684_v31  ;;  %v3372_v31 = vld [vmem:[%s4010_s2 + $0x158] sm:$0xff]  }
 0x17f   :  { %3078 = vmatpush3.bf16.msra.mxu1 %v3377_v49 }
 0x180   :  { %3079 = vmatprep.subr.bf16.mxu1 %v3378_v50 }
 0x183   :  { %3080 = vmatpush3.bf16.msra.mxu1 %v3378_v50 }
 0x184   :  { %3081 = vmatprep.subr.bf16.mxu1 %v3379_v51 }
 0x187   :  { %3082 = vmatpush3.bf16.msra.mxu1 %v3379_v51 }
 0x188   :  { %3083 = vmatprep.subr.bf16.mxu1 %v3380_v52 }
 0x18b   :  { %3084 = vmatpush3.bf16.msra.mxu1 %v3380_v52 }
 0x18c   :  { %3085 = vmatprep.subr.bf16.mxu1 %v3381_v53 }
 0x18f   :  { %3086 = vmatpush3.bf16.msra.mxu1 %v3381_v53 }
 0x190   :  { %3087 = vmatprep.subr.bf16.mxu1 %v3382_v54 }
 0x193   :  { %3088 = vmatpush3.bf16.msra.mxu1 %v3382_v54 }
 0x194   :  { %3089 = vmatprep.subr.bf16.mxu1 %v3383_v36 }
 0x197   :  { %3090 = vmatpush3.bf16.msra.mxu1 %v3383_v36 }
 0x198   :  { %3091 = vmatprep.subr.bf16.mxu1 %v3384_v37 }
 0x19b   :  { %3092 = vmatpush3.bf16.msra.mxu1 %v3384_v37 }
 0x19c   :  { %3097 = vmatprep.subr.bf16.mxu1 %v3385_v38 }
 0x251   :  { %v3015_v55 = vpop.f32.mrb[0].mxu1 }
 0x252   :  { %v788_v56 = vmax.f32 %v3015_v55, 0.0  ;;  %v767_v57 = vpop.f32.mrb[1].mxu1 }
 0x253   :  { %v786_v58 = vmax.f32 %v767_v57, 0.0  ;;  %v3016_v59 = vpop.f32.mrb[2].mxu1 }
 0x254   :  { %v800_v60 = vrot.slane %v788_v56, 7  ;;  %v789_v61 = vmax.f32 %v3016_v59, 0.0  ;;  %v770_v62 = vpop.f32.mrb[3].mxu1  ;;  %v1044_v63 = vrot.slane %v788_v56, 1 }
 0x255   :  { %v792_v0 = vrot.slane %v786_v58, 7  ;;  %v787_v1 = vmax.f32 %v770_v62, 0.0  ;;  %v1038_v2 = vrot.slane %v786_v58, 1 }
 0x256   :  { %v801_v3 = vrot.slane %v789_v61, 7  ;;  %v1045_v4 = vrot.slane %v789_v61, 1  ;;  %v843_v5 = vpack.c.bf16 %v789_v61, %v788_v56  ;;  %v805_v9 = vsel %vm24_vm0, %v788_v56, %v800_v60 }
 0x257   :  { %v793_v6 = vrot.slane %v787_v1, 7  ;;  %v1039_v7 = vrot.slane %v787_v1, 1  ;;  %v842_v8 = vpack.c.bf16 %v787_v1, %v786_v58  ;;  %v797_v10 = vsel %vm24_vm0, %v786_v58, %v792_v0 }
 0x258   :  { %v802_v12 = vsel %vm24_vm0, %v800_v60, %v801_v3  ;;  %v1046_v13 = vsel %vm270_vm1, %v1044_v63, %v1045_v4  ;;  %v1049_v14 = vsel %vm270_vm1, %v1045_v4, %v789_v61 }
 0x259   :  { %3033 = vmatprep.mubr.bf16.mxu0 %v842_v8  ;;  %v794_v15 = vsel %vm24_vm0, %v792_v0, %v793_v6  ;;  %v824_v16 = vpack.c.bf16 %v802_v12, %v805_v9  ;;  %v1040_v17 = vsel %vm270_vm1, %v1038_v2, %v1039_v7  ;;  %v1043_v18 = vsel %vm270_vm1, %v1039_v7, %v787_v1  ;;  %v3386_v1 = vld [vmem:[%s4010_s2 + $0x188] sm:$0xff]   ;;  %v3387_v12 = vld [vmem:[%s4010_s2 + $0x190] sm:$0xff]  }
 0x25a   :  { %3034 = vmatmul.mubr.bf16.vlgmr.msra.gmra.mrb[4].mxu0 %v843_v5  ;;  %v823_v19 = vpack.c.bf16 %v794_v15, %v797_v10  ;;  %v1067_v20 = vpack.c.bf16 %v1043_v18, %v1040_v17  ;;  %v1068_v21 = vpack.c.bf16 %v1049_v14, %v1046_v13  ;;  %v3388_v13 = vld [vmem:[%s4010_s2 + $0x198] sm:$0xff]   ;;  %v3389_v14 = vld [vmem:[%s4010_s2 + $0x1a0] sm:$0xff]   ;;  %v3390_v15 = vld [vmem:[%s4010_s2 + $0x1a8] sm:$0xff]  }
 0x25b   :  { %3038 = vmatpush3.bf16.msra.mxu0 %v3361_v48  ;;  %v3392_v17 = vld [vmem:[%s4010_s2 + $0x1b8] sm:$0xff]   ;;  %v3393_v18 = vld [vmem:[%s4010_s2 + $0x200] sm:$0xff]  }
 0x25c   :  { %3053 = vmatprep.mubr.bf16.mxu0 %v823_v19  ;;  %3039 = vmatprep.subr.bf16.mxu0 %v3362_v11  ;;  %v3394_v19 = vld [vmem:[%s4010_s2 + $0x208] sm:$0xff]  }
 0x25f   :  { %3040 = vmatpush3.bf16.msra.mxu0 %v3362_v11 }
 0x260   :  { %3041 = vmatprep.subr.bf16.mxu0 %v3363_v22 }
 0x263   :  { %3042 = vmatpush3.bf16.msra.mxu0 %v3363_v22  ;;  %v3397_v22 = vld [vmem:[%s4010_s2 + $0x220] sm:$0xff]  }
 0x264   :  { %3043 = vmatprep.subr.bf16.mxu0 %v3364_v23 }
 0x267   :  { %3044 = vmatpush3.bf16.msra.mxu0 %v3364_v23  ;;  %v3398_v23 = vld [vmem:[%s4010_s2 + $0x228] sm:$0xff]  }
 0x268   :  { %3045 = vmatprep.subr.bf16.mxu0 %v3365_v24 }
 0x26b   :  { %3046 = vmatpush3.bf16.msra.mxu0 %v3365_v24  ;;  %v3399_v24 = vld [vmem:[%s4010_s2 + $0x230] sm:$0xff]  }
 0x26c   :  { %3047 = vmatprep.subr.bf16.mxu0 %v3366_v25 }
 0x26f   :  { %3048 = vmatpush3.bf16.msra.mxu0 %v3366_v25  ;;  %v3400_v25 = vld [vmem:[%s4010_s2 + $0x238] sm:$0xff]  }
 0x270   :  { %3049 = vmatprep.subr.bf16.mxu0 %v3367_v26 }
 0x273   :  { %3050 = vmatpush3.bf16.msra.mxu0 %v3367_v26  ;;  %v3407_v26 = vld [vmem:[%s4010_s2 + $0x2b0] sm:$0xff]  }
 0x274   :  { %3051 = vmatprep.subr.bf16.mxu0 %v3368_v27 }
 0x277   :  { %3052 = vmatpush3.bf16.msra.mxu0 %v3368_v27  ;;  %v3408_v27 = vld [vmem:[%s4010_s2 + $0x2b8] sm:$0xff]  }
 0x278   :  { %3057 = vmatprep.subr.bf16.mxu0 %v3369_v28 }
 0x27a   :  { %3054 = vmatmul.mubr.bf16.vlgmr.msra.gmra.mrb[4].mxu0 %v824_v16  ;;  %v3391_v16 = vld [vmem:[%s4010_s2 + $0x1b0] sm:$0xff]  }
 0x27b   :  { %3058 = vmatpush3.bf16.msra.mxu0 %v3369_v28  ;;  %3073 = vmatprep.mubr.bf16.mxu0 %v1067_v20  ;;  %v3395_v20 = vld [vmem:[%s4010_s2 + $0x210] sm:$0xff]   ;;  %v3409_v28 = vld [vmem:[%s4010_s2 + $0x240] sm:$0xff]  }
 0x27c   :  { %3059 = vmatprep.subr.bf16.mxu0 %v3370_v29 }
 0x27f   :  { %3060 = vmatpush3.bf16.msra.mxu0 %v3370_v29  ;;  %v3425_v29 = vld [vmem:[%s4011_s3 + $0x40] sm:$0xff]  }
 0x280   :  { %3061 = vmatprep.subr.bf16.mxu0 %v3371_v30 }
 0x283   :  { %3062 = vmatpush3.bf16.msra.mxu0 %v3371_v30  ;;  %v3426_v30 = vld [vmem:[%s4011_s3 + $0x48] sm:$0xff]  }
 0x284   :  { %3063 = vmatprep.subr.bf16.mxu0 %v3372_v31 }
 0x287   :  { %3064 = vmatpush3.bf16.msra.mxu0 %v3372_v31  ;;  %v3427_v31 = vld [vmem:[%s4011_s3 + $0x50] sm:$0xff]  }
 0x288   :  { %3065 = vmatprep.subr.bf16.mxu0 %v3373_v32 }
 0x28b   :  { %3066 = vmatpush3.bf16.msra.mxu0 %v3373_v32  ;;  %v3428_v32 = vld [vmem:[%s4011_s3 + $0x58] sm:$0xff]  }
 0x28c   :  { %3067 = vmatprep.subr.bf16.mxu0 %v3374_v33 }
 0x28f   :  { %3068 = vmatpush3.bf16.msra.mxu0 %v3374_v33  ;;  %v3429_v33 = vld [vmem:[%s4011_s3 + $0x60] sm:$0xff]  }
 0x290   :  { %3069 = vmatprep.subr.bf16.mxu0 %v3375_v34 }
 0x293   :  { %3070 = vmatpush3.bf16.msra.mxu0 %v3375_v34  ;;  %v3430_v34 = vld [vmem:[%s4011_s3 + $0x68] sm:$0xff]  }
 0x294   :  { %3071 = vmatprep.subr.bf16.mxu0 %v3376_v35 }
 0x297   :  { %3072 = vmatpush3.bf16.msra.mxu0 %v3376_v35 }
 0x298   :  { %3137 = vmatprep.subr.bf16.mxu0 %v3401_v39 }
 0x29a   :  { %3074 = vmatmul.mubr.bf16.vlgmr.msra.gmra.mrb[4].mxu0 %v1068_v21  ;;  %v3396_v21 = vld [vmem:[%s4010_s2 + $0x218] sm:$0xff]  }
 0x29b   :  { %3138 = vmatpush3.bf16.msra.mxu0 %v3401_v39 }
 0x29c   :  { %3139 = vmatprep.subr.bf16.mxu0 %v3402_v40 }
 0x29f   :  { %3140 = vmatpush3.bf16.msra.mxu0 %v3402_v40 }
 0x2a0   :  { %3141 = vmatprep.subr.bf16.mxu0 %v3403_v41 }
 0x2a3   :  { %3142 = vmatpush3.bf16.msra.mxu0 %v3403_v41 }
 0x2a4   :  { %3143 = vmatprep.subr.bf16.mxu0 %v3404_v42 }
 0x2a7   :  { %3144 = vmatpush3.bf16.msra.mxu0 %v3404_v42 }
 0x2a8   :  { %3145 = vmatprep.subr.bf16.mxu0 %v3405_v43 }
 0x2ab   :  { %3146 = vmatpush3.bf16.msra.mxu0 %v3405_v43 }
 0x2ac   :  { %3147 = vmatprep.subr.bf16.mxu0 %v3406_v44 }
 0x2af   :  { %3148 = vmatpush3.bf16.msra.mxu0 %v3406_v44 }
 0x2b0   :  { %3149 = vmatprep.subr.bf16.mxu0 %v3407_v26 }
 0x2b3   :  { %3150 = vmatpush3.bf16.msra.mxu0 %v3407_v26 }
 0x2b4   :  { %3151 = vmatprep.subr.bf16.mxu0 %v3408_v27 }
 0x2b7   :  { %3152 = vmatpush3.bf16.msra.mxu0 %v3408_v27 }
 0x2b8   :  { %3157 = vmatprep.subr.bf16.mxu0 %v3409_v28 }
 0x36d   :  { %v3075_v45 = vpop.f32.mrb[4].mxu0 }
 0x36e   :  { %v1172_v46 = vmax.f32 %v3075_v45, 0.0  ;;  %v1151_v47 = vpop.f32.mrb[5].mxu0 }
 0x36f   :  { %v1170_v48 = vmax.f32 %v1151_v47, 0.0  ;;  %v3076_v49 = vpop.f32.mrb[6].mxu0 }
 0x370   :  { %v1184_v50 = vrot.slane %v1172_v46, 7  ;;  %v1173_v51 = vmax.f32 %v3076_v49, 0.0  ;;  %v1154_v52 = vpop.f32.mrb[7].mxu0  ;;  %v1428_v53 = vrot.slane %v1172_v46, 1 }
 0x371   :  { %v1176_v54 = vrot.slane %v1170_v48, 7  ;;  %v1171_v55 = vmax.f32 %v1154_v52, 0.0  ;;  %v1422_v56 = vrot.slane %v1170_v48, 1 }
 0x372   :  { %v1185_v57 = vrot.slane %v1173_v51, 7  ;;  %v1429_v58 = vrot.slane %v1173_v51, 1  ;;  %v1227_v59 = vpack.c.bf16 %v1173_v51, %v1172_v46  ;;  %v1189_v63 = vsel %vm24_vm0, %v1172_v46, %v1184_v50 }
 0x373   :  { %v1177_v60 = vrot.slane %v1171_v55, 7  ;;  %v1423_v61 = vrot.slane %v1171_v55, 1  ;;  %v1226_v62 = vpack.c.bf16 %v1171_v55, %v1170_v48  ;;  %v1181_v0 = vsel %vm24_vm0, %v1170_v48, %v1176_v54 }
 0x374   :  { %v1186_v2 = vsel %vm24_vm0, %v1184_v50, %v1185_v57  ;;  %v1430_v3 = vsel %vm270_vm1, %v1428_v53, %v1429_v58  ;;  %v1433_v4 = vsel %vm270_vm1, %v1429_v58, %v1173_v51 }
 0x375   :  { %3093 = vmatprep.mubr.bf16.mxu1 %v1226_v62  ;;  %v1178_v5 = vsel %vm24_vm0, %v1176_v54, %v1177_v60  ;;  %v1208_v6 = vpack.c.bf16 %v1186_v2, %v1189_v63  ;;  %v1424_v7 = vsel %vm270_vm1, %v1422_v56, %v1423_v61  ;;  %v1427_v8 = vsel %vm270_vm1, %v1423_v61, %v1171_v55  ;;  %v3410_v55 = vld [vmem:[%s4010_s2 + $0x248] sm:$0xff]   ;;  %v3411_v2 = vld [vmem:[%s4010_s2 + $0x250] sm:$0xff]  }
 0x376   :  { %3094 = vmatmul.mubr.bf16.vlgmr.msra.gmra.mrb[4].mxu1 %v1227_v59  ;;  %v1207_v9 = vpack.c.bf16 %v1178_v5, %v1181_v0  ;;  %v1451_v10 = vpack.c.bf16 %v1427_v8, %v1424_v7  ;;  %v1452_v11 = vpack.c.bf16 %v1433_v4, %v1430_v3  ;;  %v3412_v3 = vld [vmem:[%s4010_s2 + $0x258] sm:$0xff]   ;;  %v3413_v4 = vld [vmem:[%s4010_s2 + $0x260] sm:$0xff]   ;;  %v3414_v5 = vld [vmem:[%s4010_s2 + $0x268] sm:$0xff]  }
 0x377   :  { %3098 = vmatpush3.bf16.msra.mxu1 %v3385_v38  ;;  %v3416_v7 = vld [vmem:[%s4010_s2 + $0x278] sm:$0xff]   ;;  %v3417_v8 = vld [vmem:[%s4010_s2 + $0x2c0] sm:$0xff]  }
 0x378   :  { %3113 = vmatprep.mubr.bf16.mxu1 %v1207_v9  ;;  %3099 = vmatprep.subr.bf16.mxu1 %v3386_v1  ;;  %v3418_v9 = vld [vmem:[%s4010_s2 + $0x2c8] sm:$0xff]  }
 0x37b   :  { %3100 = vmatpush3.bf16.msra.mxu1 %v3386_v1 }
 0x37c   :  { %3101 = vmatprep.subr.bf16.mxu1 %v3387_v12 }
 0x37f   :  { %3102 = vmatpush3.bf16.msra.mxu1 %v3387_v12  ;;  %v3421_v12 = vld [vmem:[%s4010_s2 + $0x2e0] sm:$0xff]  }
 0x380   :  { %3103 = vmatprep.subr.bf16.mxu1 %v3388_v13 }
 0x383   :  { %3104 = vmatpush3.bf16.msra.mxu1 %v3388_v13  ;;  %v3422_v13 = vld [vmem:[%s4010_s2 + $0x2e8] sm:$0xff]  }
 0x384   :  { %3105 = vmatprep.subr.bf16.mxu1 %v3389_v14 }
 0x387   :  { %3106 = vmatpush3.bf16.msra.mxu1 %v3389_v14  ;;  %v3423_v14 = vld [vmem:[%s4010_s2 + $0x2f0] sm:$0xff]  }
 0x388   :  { %3107 = vmatprep.subr.bf16.mxu1 %v3390_v15 }
 0x38b   :  { %3108 = vmatpush3.bf16.msra.mxu1 %v3390_v15  ;;  %v3424_v15 = vld [vmem:[%s4010_s2 + $0x2f8] sm:$0xff]  }
 0x38c   :  { %3109 = vmatprep.subr.bf16.mxu1 %v3391_v16 }
 0x38f   :  { %3110 = vmatpush3.bf16.msra.mxu1 %v3391_v16  ;;  %v3431_v16 = vld [vmem:[%s4011_s3 + $0x70] sm:$0xff]  }
 0x390   :  { %3111 = vmatprep.subr.bf16.mxu1 %v3392_v17 }
 0x393   :  { %3112 = vmatpush3.bf16.msra.mxu1 %v3392_v17  ;;  %v3432_v17 = vld [vmem:[%s4011_s3 + $0x78] sm:$0xff]  }
 0x394   :  { %3117 = vmatprep.subr.bf16.mxu1 %v3393_v18 }
 0x396   :  { %3114 = vmatmul.mubr.bf16.vlgmr.msra.gmra.mrb[4].mxu1 %v1208_v6  ;;  %v3415_v6 = vld [vmem:[%s4010_s2 + $0x270] sm:$0xff]  }
 0x397   :  { %3118 = vmatpush3.bf16.msra.mxu1 %v3393_v18  ;;  %3133 = vmatprep.mubr.bf16.mxu1 %v1451_v10  ;;  %v3419_v10 = vld [vmem:[%s4010_s2 + $0x2d0] sm:$0xff]   ;;  %v3433_v18 = vld [vmem:[%s4011_s3] sm:$0xff]  }
 0x398   :  { %3119 = vmatprep.subr.bf16.mxu1 %v3394_v19 }
 0x39b   :  { %3120 = vmatpush3.bf16.msra.mxu1 %v3394_v19 }
 0x39c   :  { %3121 = vmatprep.subr.bf16.mxu1 %v3395_v20 }
 0x39f   :  { %3122 = vmatpush3.bf16.msra.mxu1 %v3395_v20 }
 0x3a0   :  { %3123 = vmatprep.subr.bf16.mxu1 %v3396_v21 }
 0x3a3   :  { %3124 = vmatpush3.bf16.msra.mxu1 %v3396_v21 }
 0x3a4   :  { %3125 = vmatprep.subr.bf16.mxu1 %v3397_v22 }
 0x3a7   :  { %3126 = vmatpush3.bf16.msra.mxu1 %v3397_v22 }
 0x3a8   :  { %3127 = vmatprep.subr.bf16.mxu1 %v3398_v23 }
 0x3ab   :  { %3128 = vmatpush3.bf16.msra.mxu1 %v3398_v23 }
 0x3ac   :  { %3129 = vmatprep.subr.bf16.mxu1 %v3399_v24 }
 0x3af   :  { %3130 = vmatpush3.bf16.msra.mxu1 %v3399_v24 }
 0x3b0   :  { %3131 = vmatprep.subr.bf16.mxu1 %v3400_v25 }
 0x3b3   :  { %3132 = vmatpush3.bf16.msra.mxu1 %v3400_v25 }
 0x3b4   :  { %3197 = vmatprep.subr.bf16.mxu1 %v3425_v29 }
 0x3b6   :  { %3134 = vmatmul.mubr.bf16.vlgmr.msra.gmra.mrb[4].mxu1 %v1452_v11  ;;  %v3420_v11 = vld [vmem:[%s4010_s2 + $0x2d8] sm:$0xff]  }
 0x3b7   :  { %3198 = vmatpush3.bf16.msra.mxu1 %v3425_v29 }
 0x3b8   :  { %3199 = vmatprep.subr.bf16.mxu1 %v3426_v30 }
 0x3bb   :  { %3200 = vmatpush3.bf16.msra.mxu1 %v3426_v30 }
 0x3bc   :  { %3201 = vmatprep.subr.bf16.mxu1 %v3427_v31 }
 0x3bf   :  { %3202 = vmatpush3.bf16.msra.mxu1 %v3427_v31 }
 0x3c0   :  { %3203 = vmatprep.subr.bf16.mxu1 %v3428_v32 }
 0x3c3   :  { %3204 = vmatpush3.bf16.msra.mxu1 %v3428_v32 }
 0x3c4   :  { %3205 = vmatprep.subr.bf16.mxu1 %v3429_v33 }
 0x3c7   :  { %3206 = vmatpush3.bf16.msra.mxu1 %v3429_v33 }
 0x3c8   :  { %3207 = vmatprep.subr.bf16.mxu1 %v3430_v34 }
 0x3cb   :  { %3208 = vmatpush3.bf16.msra.mxu1 %v3430_v34 }
 0x3cc   :  { %3209 = vmatprep.subr.bf16.mxu1 %v3431_v16 }
 0x3cf   :  { %3210 = vmatpush3.bf16.msra.mxu1 %v3431_v16 }
 0x3d0   :  { %3211 = vmatprep.subr.bf16.mxu1 %v3432_v17 }
 0x3d3   :  { %3212 = vmatpush3.bf16.msra.mxu1 %v3432_v17 }
 0x3d4   :  { %3217 = vmatprep.subr.bf16.mxu1 %v3433_v18 }
 0x489   :  { %v3135_v35 = vpop.f32.mrb[4].mxu1 }
 0x48a   :  { %v1556_v36 = vmax.f32 %v3135_v35, 0.0  ;;  %v1535_v37 = vpop.f32.mrb[5].mxu1 }
 0x48b   :  { %v1554_v38 = vmax.f32 %v1535_v37, 0.0  ;;  %v3136_v39 = vpop.f32.mrb[6].mxu1 }
 0x48c   :  { %v1568_v40 = vrot.slane %v1556_v36, 7  ;;  %v1557_v41 = vmax.f32 %v3136_v39, 0.0  ;;  %v1538_v42 = vpop.f32.mrb[7].mxu1  ;;  %v1812_v43 = vrot.slane %v1556_v36, 1  ;;  %v3434_v39 = vld [vmem:[%s4011_s3 + $0x8] sm:$0xff]  }
 0x48d   :  { %v1560_v44 = vrot.slane %v1554_v38, 7  ;;  %v1555_v45 = vmax.f32 %v1538_v42, 0.0  ;;  %v1806_v46 = vrot.slane %v1554_v38, 1 }
 0x48e   :  { %v1569_v47 = vrot.slane %v1557_v41, 7  ;;  %v1813_v48 = vrot.slane %v1557_v41, 1  ;;  %v1611_v49 = vpack.c.bf16 %v1557_v41, %v1556_v36  ;;  %v1573_v53 = vsel %vm24_vm0, %v1556_v36, %v1568_v40 }
 0x48f   :  { %v1561_v50 = vrot.slane %v1555_v45, 7  ;;  %v1807_v51 = vrot.slane %v1555_v45, 1  ;;  %v1610_v52 = vpack.c.bf16 %v1555_v45, %v1554_v38  ;;  %v1565_v54 = vsel %vm24_vm0, %v1554_v38, %v1560_v44 }
 0x490   :  { %v1570_v56 = vsel %vm24_vm0, %v1568_v40, %v1569_v47  ;;  %v1814_v57 = vsel %vm270_vm1, %v1812_v43, %v1813_v48  ;;  %v1817_v58 = vsel %vm270_vm1, %v1813_v48, %v1557_v41 }
 0x491   :  { %3153 = vmatprep.mubr.bf16.mxu0 %v1610_v52  ;;  %v1562_v59 = vsel %vm24_vm0, %v1560_v44, %v1561_v50  ;;  %v1592_v60 = vpack.c.bf16 %v1570_v56, %v1573_v53  ;;  %v1808_v61 = vsel %vm270_vm1, %v1806_v46, %v1807_v51  ;;  %v1811_v62 = vsel %vm270_vm1, %v1807_v51, %v1555_v45  ;;  %v3435_v50 = vld [vmem:[%s4011_s3 + $0x10] sm:$0xff]   ;;  %v3436_v51 = vld [vmem:[%s4011_s3 + $0x18] sm:$0xff]   ;;  %v3437_v52 = vld [vmem:[%s4011_s3 + $0x20] sm:$0xff]  }
 0x492   :  { %3154 = vmatmul.mubr.bf16.vlgmr.msra.gmra.mrb[8].mxu0 %v1611_v49  ;;  %v1591_v63 = vpack.c.bf16 %v1562_v59, %v1565_v54  ;;  %v1835_v0 = vpack.c.bf16 %v1811_v62, %v1808_v61  ;;  %v1836_v1 = vpack.c.bf16 %v1817_v58, %v1814_v57  ;;  %v3438_v53 = vld [vmem:[%s4011_s3 + $0x28] sm:$0xff]   ;;  %v3439_v54 = vld [vmem:[%s4011_s3 + $0x30] sm:$0xff]   ;;  %v3441_v56 = vld [vmem:[%s4011_s3 + $0x80] sm:$0xff]  }
 0x493   :  { %3158 = vmatpush3.bf16.msra.mxu0 %v3409_v28  ;;  %v3442_v57 = vld [vmem:[%s4011_s3 + $0x88] sm:$0xff]   ;;  %v3443_v58 = vld [vmem:[%s4011_s3 + $0x90] sm:$0xff]   ;;  %v3444_v59 = vld [vmem:[%s4011_s3 + $0x98] sm:$0xff]  }
 0x494   :  { %3173 = vmatprep.mubr.bf16.mxu0 %v1591_v63  ;;  %3159 = vmatprep.subr.bf16.mxu0 %v3410_v55  ;;  %v3446_v61 = vld [vmem:[%s4011_s3 + $0xa8] sm:$0xff]   ;;  %v3447_v62 = vld [vmem:[%s4011_s3 + $0xb0] sm:$0xff]   ;;  %v3448_v63 = vld [vmem:[%s4011_s3 + $0xb8] sm:$0xff]  }
 0x497   :  { %3160 = vmatpush3.bf16.msra.mxu0 %v3410_v55  ;;  %v3440_v55 = vld [vmem:[%s4011_s3 + $0x38] sm:$0xff]  }
 0x498   :  { %3161 = vmatprep.subr.bf16.mxu0 %v3411_v2 }
 0x49b   :  { %3162 = vmatpush3.bf16.msra.mxu0 %v3411_v2 }
 0x49c   :  { %3163 = vmatprep.subr.bf16.mxu0 %v3412_v3 }
 0x49f   :  { %3164 = vmatpush3.bf16.msra.mxu0 %v3412_v3 }
 0x4a0   :  { %3165 = vmatprep.subr.bf16.mxu0 %v3413_v4 }
 0x4a3   :  { %3166 = vmatpush3.bf16.msra.mxu0 %v3413_v4 }
 0x4a4   :  { %3167 = vmatprep.subr.bf16.mxu0 %v3414_v5 }
 0x4a7   :  { %3168 = vmatpush3.bf16.msra.mxu0 %v3414_v5 }
 0x4a8   :  { %3169 = vmatprep.subr.bf16.mxu0 %v3415_v6 }
 0x4ab   :  { %3170 = vmatpush3.bf16.msra.mxu0 %v3415_v6 }
 0x4ac   :  { %3171 = vmatprep.subr.bf16.mxu0 %v3416_v7 }
 0x4af   :  { %3172 = vmatpush3.bf16.msra.mxu0 %v3416_v7 }
 0x4b0   :  { %3177 = vmatprep.subr.bf16.mxu0 %v3417_v8 }
 0x4b2   :  { %3174 = vmatmul.mubr.bf16.vlgmr.msra.gmra.mrb[8].mxu0 %v1592_v60  ;;  %v3445_v60 = vld [vmem:[%s4011_s3 + $0xa0] sm:$0xff]  }
 0x4b3   :  { %3178 = vmatpush3.bf16.msra.mxu0 %v3417_v8  ;;  %3193 = vmatprep.mubr.bf16.mxu0 %v1835_v0 }
 0x4b4   :  { %3179 = vmatprep.subr.bf16.mxu0 %v3418_v9 }
 0x4b7   :  { %3180 = vmatpush3.bf16.msra.mxu0 %v3418_v9 }
 0x4b8   :  { %3181 = vmatprep.subr.bf16.mxu0 %v3419_v10 }
 0x4bb   :  { %3182 = vmatpush3.bf16.msra.mxu0 %v3419_v10 }
 0x4bc   :  { %3183 = vmatprep.subr.bf16.mxu0 %v3420_v11 }
 0x4bf   :  { %3184 = vmatpush3.bf16.msra.mxu0 %v3420_v11 }
 0x4c0   :  { %3185 = vmatprep.subr.bf16.mxu0 %v3421_v12 }
 0x4c3   :  { %3186 = vmatpush3.bf16.msra.mxu0 %v3421_v12 }
 0x4c4   :  { %3187 = vmatprep.subr.bf16.mxu0 %v3422_v13 }
 0x4c7   :  { %3188 = vmatpush3.bf16.msra.mxu0 %v3422_v13 }
 0x4c8   :  { %3189 = vmatprep.subr.bf16.mxu0 %v3423_v14 }
 0x4cb   :  { %3190 = vmatpush3.bf16.msra.mxu0 %v3423_v14 }
 0x4cc   :  { %3191 = vmatprep.subr.bf16.mxu0 %v3424_v15 }
 0x4cf   :  { %3192 = vmatpush3.bf16.msra.mxu0 %v3424_v15 }
 0x4d2   :  { %3194 = vmatmul.mubr.bf16.vlgmr.msra.gmra.mrb[8].mxu0 %v1836_v1 }
 0x5a5   :  { %v3195_v19 = vpop.f32.mrb[8].mxu0 }
 0x5a6   :  { %v1940_v20 = vmax.f32 %v3195_v19, 0.0  ;;  %v1919_v21 = vpop.f32.mrb[9].mxu0 }
 0x5a7   :  { %v1938_v22 = vmax.f32 %v1919_v21, 0.0  ;;  %v3196_v23 = vpop.f32.mrb[10].mxu0 }
 0x5a8   :  { %v1952_v24 = vrot.slane %v1940_v20, 7  ;;  %v1941_v25 = vmax.f32 %v3196_v23, 0.0  ;;  %v1922_v26 = vpop.f32.mrb[11].mxu0  ;;  %v2195_v27 = vrot.slane %v1940_v20, 1 }
 0x5a9   :  { %v1944_v28 = vrot.slane %v1938_v22, 7  ;;  %v1939_v29 = vmax.f32 %v1922_v26, 0.0  ;;  %v2189_v30 = vrot.slane %v1938_v22, 1 }
 0x5aa   :  { %v1953_v31 = vrot.slane %v1941_v25, 7  ;;  %v2196_v32 = vrot.slane %v1941_v25, 1  ;;  %v1994_v33 = vpack.c.bf16 %v1941_v25, %v1940_v20  ;;  %v1957_v37 = vsel %vm24_vm0, %v1940_v20, %v1952_v24 }
 0x5ab   :  { %v1945_v34 = vrot.slane %v1939_v29, 7  ;;  %v2190_v35 = vrot.slane %v1939_v29, 1  ;;  %v1993_v36 = vpack.c.bf16 %v1939_v29, %v1938_v22  ;;  %v1949_v38 = vsel %vm24_vm0, %v1938_v22, %v1944_v28 }
 0x5ac   :  { %v1954_v40 = vsel %vm24_vm0, %v1952_v24, %v1953_v31  ;;  %v2197_v41 = vsel %vm270_vm1, %v2195_v27, %v2196_v32  ;;  %v2200_v42 = vsel %vm270_vm1, %v2196_v32, %v1941_v25 }
 0x5ad   :  { %3213 = vmatprep.mubr.bf16.mxu1 %v1993_v36  ;;  %v1946_v43 = vsel %vm24_vm0, %v1944_v28, %v1945_v34  ;;  %v1975_v44 = vpack.c.bf16 %v1954_v40, %v1957_v37  ;;  %v2191_v45 = vsel %vm270_vm1, %v2189_v30, %v2190_v35  ;;  %v2194_v46 = vsel %vm270_vm1, %v2190_v35, %v1939_v29 }
 0x5ae   :  { %3214 = vmatmul.mubr.bf16.vlgmr.msra.gmra.mrb[8].mxu1 %v1994_v33  ;;  %v1974_v47 = vpack.c.bf16 %v1946_v43, %v1949_v38  ;;  %v2218_v48 = vpack.c.bf16 %v2194_v46, %v2191_v45  ;;  %v2219_v49 = vpack.c.bf16 %v2200_v42, %v2197_v41 }
 0x5af   :  { %3218 = vmatpush3.bf16.msra.mxu1 %v3433_v18 }
 0x5b0   :  { %3233 = vmatprep.mubr.bf16.mxu1 %v1974_v47  ;;  %3219 = vmatprep.subr.bf16.mxu1 %v3434_v39 }
 0x5b3   :  { %3220 = vmatpush3.bf16.msra.mxu1 %v3434_v39 }
 0x5b4   :  { %3221 = vmatprep.subr.bf16.mxu1 %v3435_v50 }
 0x5b7   :  { %3222 = vmatpush3.bf16.msra.mxu1 %v3435_v50 }
 0x5b8   :  { %3223 = vmatprep.subr.bf16.mxu1 %v3436_v51 }
 0x5bb   :  { %3224 = vmatpush3.bf16.msra.mxu1 %v3436_v51 }
 0x5bc   :  { %3225 = vmatprep.subr.bf16.mxu1 %v3437_v52 }
 0x5bf   :  { %3226 = vmatpush3.bf16.msra.mxu1 %v3437_v52 }
 0x5c0   :  { %3227 = vmatprep.subr.bf16.mxu1 %v3438_v53 }
 0x5c3   :  { %3228 = vmatpush3.bf16.msra.mxu1 %v3438_v53 }
 0x5c4   :  { %3229 = vmatprep.subr.bf16.mxu1 %v3439_v54 }
 0x5c7   :  { %3230 = vmatpush3.bf16.msra.mxu1 %v3439_v54 }
 0x5c8   :  { %3231 = vmatprep.subr.bf16.mxu1 %v3440_v55 }
 0x5cb   :  { %3232 = vmatpush3.bf16.msra.mxu1 %v3440_v55 }
 0x5cc   :  { %3237 = vmatprep.subr.bf16.mxu1 %v3441_v56 }
 0x5ce   :  { %3234 = vmatmul.mubr.bf16.vlgmr.msra.gmra.mrb[8].mxu1 %v1975_v44 }
 0x5cf   :  { %3238 = vmatpush3.bf16.msra.mxu1 %v3441_v56  ;;  %3253 = vmatprep.mubr.bf16.mxu1 %v2218_v48 }
 0x5d0   :  { %3239 = vmatprep.subr.bf16.mxu1 %v3442_v57 }
 0x5d3   :  { %3240 = vmatpush3.bf16.msra.mxu1 %v3442_v57 }
 0x5d4   :  { %3241 = vmatprep.subr.bf16.mxu1 %v3443_v58 }
 0x5d7   :  { %3242 = vmatpush3.bf16.msra.mxu1 %v3443_v58 }
 0x5d8   :  { %3243 = vmatprep.subr.bf16.mxu1 %v3444_v59 }
 0x5db   :  { %3244 = vmatpush3.bf16.msra.mxu1 %v3444_v59 }
 0x5dc   :  { %3245 = vmatprep.subr.bf16.mxu1 %v3445_v60 }
 0x5df   :  { %3246 = vmatpush3.bf16.msra.mxu1 %v3445_v60 }
 0x5e0   :  { %3247 = vmatprep.subr.bf16.mxu1 %v3446_v61 }
 0x5e3   :  { %3248 = vmatpush3.bf16.msra.mxu1 %v3446_v61 }
 0x5e4   :  { %3249 = vmatprep.subr.bf16.mxu1 %v3447_v62 }
 0x5e7   :  { %3250 = vmatpush3.bf16.msra.mxu1 %v3447_v62 }
 0x5e8   :  { %3251 = vmatprep.subr.bf16.mxu1 %v3448_v63 }
 0x5eb   :  { %3252 = vmatpush3.bf16.msra.mxu1 %v3448_v63 }
 0x5ee   :  { %3254 = vmatmul.mubr.bf16.vlgmr.msra.gmra.mrb[8].mxu1 %v2219_v49 }
 0x6c1   :  { %v3255_v0 = vpop.f32.mrb[8].mxu1 }
 0x6c2   :  { %v2323_v1 = vmax.f32 %v3255_v0, 0.0  ;;  %v2302_v2 = vpop.f32.mrb[9].mxu1 }
 0x6c3   :  { %v2321_v3 = vmax.f32 %v2302_v2, 0.0  ;;  %v3256_v4 = vpop.f32.mrb[10].mxu1 }
 0x6c4   :  { %2327 = vst [vmem:[%s4012_s4 + $0x10] sm:$0xff] %v2323_v1  ;;  %v2324_v5 = vmax.f32 %v3256_v4, 0.0  ;;  %v2305_v6 = vpop.f32.mrb[11].mxu1 }
 0x6c5   :  { %2325 = vst [vmem:[%s4012_s4] sm:$0xff] %v2321_v3  ;;  %v2322_v7 = vmax.f32 %v2305_v6, 0.0 }
 0x6c6   :  { %2328 = vst [vmem:[%s4012_s4 + $0x18] sm:$0xff] %v2324_v5 }
 0x6c7   :  { %2326 = vst [vmem:[%s4012_s4 + $0x8] sm:$0xff] %v2322_v7 }

</bundles_post_ra>
